<compile_context>
chip_gen: v6e
topology: v6e:2x2x1
jax: 0.10.0
libtpu: 0.0.40
codegen_flags: <defaults>
</compile_context>

<pallas_src>
import functools

import jax
import jax.numpy as jnp
from jax import lax
from jax.experimental import pallas as pl
from jax.experimental.pallas import tpu as pltpu


def boundary_padding_nhwc(x, p=2):
    """Circular (wrap) padding of H and W dims; matches torch boundary_padding."""
    return jnp.pad(x, ((0, 0), (p, p), (p, p), (0, 0)), mode="wrap")


def convlstm_kernel(w_ref, p_ref, b_ref, c_ref, h_out_ref, c_out_ref, *, Ch):
    """Gate-major fused ConvLSTM update for one pixel tile.

    w_ref    : (4*Ch, KP)  bf16 fused gate-major weights (sigmoid rows pre-scaled by 0.5)
    p_ref    : (KP, TM)    bf16 transposed im2col patches (x+h taps, zero pad rows)
    b_ref    : (4*Ch, 1)   f32 bias column (sigmoid rows pre-scaled by 0.5)
    c_ref    : (Ch, TM)    f32 cell state, channel-major
    h_out_ref: (Ch, TM)    f32 new hidden state (lane-dense)
    c_out_ref: (Ch, TM)    f32 new cell state (lane-dense)
    """
    # Single deep MXU GEMM, f32 accumulation, gate-major (4*Ch, TM) result.
    acc = jnp.dot(w_ref[...], p_ref[...], preferred_element_type=jnp.float32)
    z = acc + b_ref[...]          # f32 bias add, broadcast along lanes
    t = jnp.tanh(z)               # one full-width EUP pass for all four gates

    # Gate order [i, f, c, o]; sigmoid gates via sigmoid(x) = 0.5*tanh(x/2) + 0.5
    # (their GEMM rows already carry the x/2 pre-scale).  Sublane slices, 8-aligned.
    gi = 0.5 * t[0 * Ch:1 * Ch, :] + 0.5
    gf = 0.5 * t[1 * Ch:2 * Ch, :] + 0.5
    gc = t[2 * Ch:3 * Ch, :]
    go = 0.5 * t[3 * Ch:4 * Ch, :] + 0.5

    c_new = gf * c_ref[...] + gi * gc
    h_new = go * jnp.tanh(c_new)

    c_out_ref[...] = c_new.astype(c_out_ref.dtype)
    h_out_ref[...] = h_new.astype(h_out_ref.dtype)


def _default_col_tiles():
    """>=2 parallel pixel tiles on 2-TensorCore chips (v4/v5p/v7x), 1 otherwise."""
    try:
        kind = jax.devices()[0].device_kind.lower()
    except Exception:
        return 1
    if any(s in kind for s in ("7", "v4", "v5p")):
        return 2
    return 1


def convlstm_cell(x, h, c, wx, wh, bias, *, K=5, p=2, col_tiles=None):
    """Pallas ConvLSTMCell forward.  Returns (h_new, c_new), both (B,H,W,Ch).

    x: (B,H,W,Cin), h/c: (B,H,W,Ch); wx: (K,K,Cin,4*Ch), wh: (K,K,Ch,4*Ch),
    bias: (4*Ch,), packed gate order [i, f, c, o] (as in the module __init__).
    """
    B, H, W, Cin = x.shape
    Ch = h.shape[-1]
    M = B * H * W
    G = 4 * Ch
    KKC = K * K * (Cin + Ch)
    KP = ((KKC + 127) // 128) * 128             # pad contraction dim to a lane multiple

    assert M % 128 == 0, "B*H*W must be a multiple of 128 (lane-dense pixel tiles)"
    if col_tiles is None:
        col_tiles = _default_col_tiles()
    while col_tiles > 1 and not (M % col_tiles == 0 and (M // col_tiles) % 128 == 0):
        col_tiles -= 1
    TM = M // col_tiles

    # Cast once to bf16 (GEMM operand dtype) BEFORE im2col: the patch matrix is built
    # a single time in bf16 (no f32 patch matrix, no separate astype pass).
    xp = boundary_padding_nhwc(x, p).astype(jnp.bfloat16)   # (B, H+2p, W+2p, Cin)
    hp = boundary_padding_nhwc(h, p).astype(jnp.bfloat16)   # (B, H+2p, W+2p, Ch)

    # Transposed im2col: contraction-major patches (KP, M), pixels on lanes.
    taps = []
    for di in range(K):
        for dj in range(K):
            for src, csrc in ((xp, Cin), (hp, Ch)):
                tap = src[:, di:di + H, dj:dj + W, :]            # (B,H,W,Csrc)
                taps.append(jnp.moveaxis(tap, -1, 0).reshape(csrc, M))
    taps.append(jnp.zeros((KP - KKC, M), jnp.bfloat16))          # contraction pad rows
    patches_t = jnp.concatenate(taps, axis=0)                    # (KP, M) bf16

    # Gate-major fused weights (4*Ch, KP).  Pre-scale sigmoid gate rows [i,f,·,o] by
    # 0.5 (exact in bf16) so the kernel needs only one tanh; gate order stays [i,f,c,o].
    gate_scale = jnp.concatenate(
        [jnp.full((2 * Ch,), 0.5), jnp.ones((Ch,)), jnp.full((Ch,), 0.5)]
    ).astype(jnp.float32)
    wcat = jnp.concatenate([wx, wh], axis=2).reshape(KKC, G)     # (KKC, 4Ch)
    w_t = (wcat.T * gate_scale[:, None]).astype(jnp.bfloat16)    # (4Ch, KKC)
    w_t = jnp.concatenate(
        [w_t, jnp.zeros((G, KP - KKC), jnp.bfloat16)], axis=1)   # (4Ch, KP)

    # Bias stays f32 and is added after the GEMM (no bf16 rounding of the bias).
    bias_col = (bias.astype(jnp.float32) * gate_scale).reshape(G, 1)

    c_t = c.reshape(M, Ch).T.astype(jnp.float32)                 # (Ch, M) channel-major

    kernel = functools.partial(convlstm_kernel, Ch=Ch)

    grid_spec = pltpu.PrefetchScalarGridSpec(
        num_scalar_prefetch=0,
        grid=(col_tiles,),
        in_specs=[
            pl.BlockSpec((G, KP), lambda g: (0, 0)),    # fused weights (grid-resident)
            pl.BlockSpec((KP, TM), lambda g: (0, g)),   # patch tile, pixels on lanes
            pl.BlockSpec((G, 1), lambda g: (0, 0)),     # f32 bias column (resident)
            pl.BlockSpec((Ch, TM), lambda g: (0, g)),   # cell-state tile
        ],
        out_specs=[
            pl.BlockSpec((Ch, TM), lambda g: (0, g)),   # h_new, lane-dense (TM >= 256)
            pl.BlockSpec((Ch, TM), lambda g: (0, g)),   # c_new
        ],
    )

    h_t, c_t_new = pl.pallas_call(
        kernel,
        out_shape=(
            jax.ShapeDtypeStruct((Ch, M), jnp.float32),
            jax.ShapeDtypeStruct((Ch, M), jnp.float32),
        ),
        grid_spec=grid_spec,
        compiler_params=pltpu.CompilerParams(
            dimension_semantics=("parallel",),          # shard pixel tiles across TCs
            vmem_limit_bytes=32 * 1024 * 1024,          # explicit; fits v7x 64 MiB/TC
        ),
    )(w_t, patches_t, bias_col, c_t)

    h_new = h_t.T.reshape(B, H, W, Ch).astype(x.dtype)
    c_new = c_t_new.T.reshape(B, H, W, Ch).astype(x.dtype)
    return h_new, c_new


def convlstm_cell_ref(x, h, c, wx, wh, bias, *, p=2, operand_dtype=jnp.float32):
    """Pure-JAX reference (lax conv) mirroring the PyTorch forward.

    operand_dtype=bf16 mimics the kernel's bf16 GEMM operands (f32 accumulate).
    """
    Ch = h.shape[-1]
    xp = boundary_padding_nhwc(x, p).astype(operand_dtype)
    hp = boundary_padding_nhwc(h, p).astype(operand_dtype)
    wxo = wx.astype(operand_dtype)
    who = wh.astype(operand_dtype)
    dnx = lax.conv_dimension_numbers(xp.shape, wxo.shape, ("NHWC", "HWIO", "NHWC"))
    dnh = lax.conv_dimension_numbers(hp.shape, who.shape, ("NHWC", "HWIO", "NHWC"))
    gx = lax.conv_general_dilated(xp, wxo, (1, 1), "VALID", dimension_numbers=dnx,
                                  preferred_element_type=jnp.float32)
    gh = lax.conv_general_dilated(hp, who, (1, 1), "VALID", dimension_numbers=dnh,
                                  preferred_element_type=jnp.float32)
    g = gx + gh + bias.reshape(1, 1, 1, -1).astype(jnp.float32)
    gi = jax.nn.sigmoid(g[..., 0 * Ch:1 * Ch])
    gf = jax.nn.sigmoid(g[..., 1 * Ch:2 * Ch])
    gc = jnp.tanh(g[..., 2 * Ch:3 * Ch])
    go = jax.nn.sigmoid(g[..., 3 * Ch:4 * Ch])
    c_new = gf * c.astype(jnp.float32) + gi * gc
    h_new = go * jnp.tanh(c_new)
    return h_new.astype(x.dtype), c_new.astype(x.dtype)


if __name__ == "__main__":
    # Small deterministic config: 2D Burgers -> 2 input channels (u, v).
    B, H, W = 2, 16, 16
    Cin, Ch, K = 2, 32, 5   # hidden_kernel_size = input_kernel_size = 5

    key = jax.random.PRNGKey(0)
    kx, kh, kc, kwx, kwh = jax.random.split(key, 5)

    x = jax.random.normal(kx, (B, H, W, Cin), jnp.float32)
    h = jax.random.normal(kh, (B, H, W, Ch), jnp.float32)
    c = jax.random.normal(kc, (B, H, W, Ch), jnp.float32)

    # Deterministic weight init (kaiming-uniform-like scale), HWIO, gate order [i,f,c,o].
    bound_x = 1.0 / jnp.sqrt(Cin * K * K)
    bound_h = 1.0 / jnp.sqrt(Ch * K * K)
    wx = jax.random.uniform(kwx, (K, K, Cin, 4 * Ch), jnp.float32, -bound_x, bound_x)
    wh = jax.random.uniform(kwh, (K, K, Ch, 4 * Ch), jnp.float32, -bound_h, bound_h)
    # Biases: Wxi = Wxf = Wxc = 0, Wxo = 1 (as in the module __init__).
    bias = jnp.concatenate(
        [jnp.zeros((3 * Ch,), jnp.float32), jnp.ones((Ch,), jnp.float32)])

    h_new, c_new = convlstm_cell(x, h, c, wx, wh, bias, K=K, p=2)
    jax.block_until_ready((h_new, c_new))

    # Strict check vs a reference whose matmul operands are bf16-rounded like the kernel.
    h_ref_b, c_ref_b = convlstm_cell_ref(x, h, c, wx, wh, bias, p=2,
                                         operand_dtype=jnp.bfloat16)
    assert jnp.allclose(h_new, h_ref_b, atol=5e-3, rtol=5e-3), "h mismatch (bf16 ref)"
    assert jnp.allclose(c_new, c_ref_b, atol=5e-3, rtol=5e-3), "c mismatch (bf16 ref)"

    # Loose check vs the full-f32 reference (bf16 GEMM operands -> ~1e-2 expected error).
    h_ref, c_ref_f = convlstm_cell_ref(x, h, c, wx, wh, bias, p=2)
    assert jnp.allclose(h_new, h_ref, atol=5e-2, rtol=5e-2), "h mismatch (f32 ref)"
    assert jnp.allclose(c_new, c_ref_f, atol=5e-2, rtol=5e-2), "c mismatch (f32 ref)"

    print("KERNEL_OK")
</pallas_src>

<mosaic_0001>
module attributes {stable_mosaic.version = 11 : i64} {
  func.func @convlstm_kernel(%arg0: i32, %arg1: memref<128x896xbf16, #tpu.memory_space<vmem>>, %arg2: memref<896x512xbf16, #tpu.memory_space<vmem>>, %arg3: memref<128x1xf32, #tpu.memory_space<vmem>>, %arg4: memref<32x512xf32, #tpu.memory_space<vmem>>, %arg5: memref<32x512xf32, #tpu.memory_space<vmem>>, %arg6: memref<32x512xf32, #tpu.memory_space<vmem>>) attributes {dimension_semantics = [#tpu.dimension_semantics<parallel>], iteration_bounds = array<i64: 1>, scalar_prefetch = 0 : i64, scratch_operands = 0 : i64, tpu.core_type = #tpu.core_type<tc>, window_params = [{pipeline_mode = #tpu.pipeline_mode<synchronous>, transform_indices = @transform_0, window_bounds = array<i64: 128, 896>}, {transform_indices = @transform_1, window_bounds = array<i64: 896, 512>}, {pipeline_mode = #tpu.pipeline_mode<synchronous>, transform_indices = @transform_2, window_bounds = array<i64: 128, 1>}, {transform_indices = @transform_3, window_bounds = array<i64: 32, 512>}, {transform_indices = @transform_4, window_bounds = array<i64: 32, 512>}, {transform_indices = @transform_5, window_bounds = array<i64: 32, 512>}]} {
    %c0 = arith.constant 0 : index
    %c0_0 = arith.constant 0 : index
    %0 = vector.load %arg1[%c0, %c0_0] : memref<128x896xbf16, #tpu.memory_space<vmem>>, vector<128x896xbf16>
    %c0_1 = arith.constant 0 : index
    %c0_2 = arith.constant 0 : index
    %1 = vector.load %arg2[%c0_1, %c0_2] : memref<896x512xbf16, #tpu.memory_space<vmem>>, vector<896x512xbf16>
    %cst = arith.constant dense<0.000000e+00> : vector<128x512xf32>
    %2 = tpu.matmul %0, %1, %cst {dimension_numbers = #tpu.dot_dimension_numbers<[1], [0], [0], [1], [0, 0, 1, 1], [], []>} : vector<128x896xbf16>, vector<896x512xbf16>, vector<128x512xf32> -> vector<128x512xf32>
    %c0_3 = arith.constant 0 : index
    %c0_4 = arith.constant 0 : index
    %3 = vector.load %arg3[%c0_3, %c0_4] : memref<128x1xf32, #tpu.memory_space<vmem>>, vector<128x1xf32>
    %4 = vector.broadcast %3 : vector<128x1xf32> to vector<128x512xf32>
    %5 = arith.addf %2, %4 : vector<128x512xf32>
    %6 = math.tanh %5 : vector<128x512xf32>
    %7 = vector.extract_strided_slice %6 {offsets = [0, 0], sizes = [32, 512], strides = [1, 1]} : vector<128x512xf32> to vector<32x512xf32>
    %cst_5 = arith.constant 5.000000e-01 : f32
    %8 = vector.broadcast %cst_5 : f32 to vector<32x512xf32>
    %9 = arith.mulf %8, %7 : vector<32x512xf32>
    %cst_6 = arith.constant 5.000000e-01 : f32
    %10 = vector.broadcast %cst_6 : f32 to vector<32x512xf32>
    %11 = arith.addf %9, %10 : vector<32x512xf32>
    %12 = vector.extract_strided_slice %6 {offsets = [32, 0], sizes = [32, 512], strides = [1, 1]} : vector<128x512xf32> to vector<32x512xf32>
    %cst_7 = arith.constant 5.000000e-01 : f32
    %13 = vector.broadcast %cst_7 : f32 to vector<32x512xf32>
    %14 = arith.mulf %13, %12 : vector<32x512xf32>
    %cst_8 = arith.constant 5.000000e-01 : f32
    %15 = vector.broadcast %cst_8 : f32 to vector<32x512xf32>
    %16 = arith.addf %14, %15 : vector<32x512xf32>
    %17 = vector.extract_strided_slice %6 {offsets = [64, 0], sizes = [32, 512], strides = [1, 1]} : vector<128x512xf32> to vector<32x512xf32>
    %18 = vector.extract_strided_slice %6 {offsets = [96, 0], sizes = [32, 512], strides = [1, 1]} : vector<128x512xf32> to vector<32x512xf32>
    %cst_9 = arith.constant 5.000000e-01 : f32
    %19 = vector.broadcast %cst_9 : f32 to vector<32x512xf32>
    %20 = arith.mulf %19, %18 : vector<32x512xf32>
    %cst_10 = arith.constant 5.000000e-01 : f32
    %21 = vector.broadcast %cst_10 : f32 to vector<32x512xf32>
    %22 = arith.addf %20, %21 : vector<32x512xf32>
    %c0_11 = arith.constant 0 : index
    %c0_12 = arith.constant 0 : index
    %23 = vector.load %arg4[%c0_11, %c0_12] : memref<32x512xf32, #tpu.memory_space<vmem>>, vector<32x512xf32>
    %24 = arith.mulf %16, %23 : vector<32x512xf32>
    %25 = arith.mulf %11, %17 : vector<32x512xf32>
    %26 = arith.addf %24, %25 : vector<32x512xf32>
    %27 = math.tanh %26 : vector<32x512xf32>
    %28 = arith.mulf %22, %27 : vector<32x512xf32>
    %c0_13 = arith.constant 0 : index
    %c0_14 = arith.constant 0 : index
    %29 = vector.load %arg6[%c0_13, %c0_14] : memref<32x512xf32, #tpu.memory_space<vmem>>, vector<32x512xf32>
    tpu.vector_store %arg6[%c0_13, %c0_14], %26 {strides = array<i32>} : memref<32x512xf32, #tpu.memory_space<vmem>>, vector<32x512xf32>,
    %c0_15 = arith.constant 0 : index
    %c0_16 = arith.constant 0 : index
    %30 = vector.load %arg5[%c0_15, %c0_16] : memref<32x512xf32, #tpu.memory_space<vmem>>, vector<32x512xf32>
    tpu.vector_store %arg5[%c0_15, %c0_16], %28 {strides = array<i32>} : memref<32x512xf32, #tpu.memory_space<vmem>>, vector<32x512xf32>,
    return
  }
  func.func @transform_0(%arg0: i32) -> (i32, i32) {
    %c0_i32 = arith.constant 0 : i32
    %c0_i32_0 = arith.constant 0 : i32
    %c0_i32_1 = arith.constant 0 : i32
    return %c0_i32, %c0_i32_0 : i32, i32
  }
  func.func @transform_1(%arg0: i32) -> (i32, i32) {
    %c0_i32 = arith.constant 0 : i32
    %c0_i32_0 = arith.constant 0 : i32
    return %c0_i32, %arg0 : i32, i32
  }
  func.func @transform_2(%arg0: i32) -> (i32, i32) {
    %c0_i32 = arith.constant 0 : i32
    %c0_i32_0 = arith.constant 0 : i32
    %c0_i32_1 = arith.constant 0 : i32
    return %c0_i32, %c0_i32_0 : i32, i32
  }
  func.func @transform_3(%arg0: i32) -> (i32, i32) {
    %c0_i32 = arith.constant 0 : i32
    %c0_i32_0 = arith.constant 0 : i32
    return %c0_i32, %arg0 : i32, i32
  }
  func.func @transform_4(%arg0: i32) -> (i32, i32) {
    %c0_i32 = arith.constant 0 : i32
    %c0_i32_0 = arith.constant 0 : i32
    return %c0_i32, %arg0 : i32, i32
  }
  func.func @transform_5(%arg0: i32) -> (i32, i32) {
    %c0_i32 = arith.constant 0 : i32
    %c0_i32_0 = arith.constant 0 : i32
    return %c0_i32, %arg0 : i32, i32
  }
}

</mosaic_0001>

<bundles_post_ra>
// kernel: tpu_custom_call.1
= control target key start
LH: loop header
LB: loop body
LE: loop exit
PB: predicated region body
PF: predicated region fallthrough
CT: control target
= control target key end

     0   :  { %11 = vsyncpa [#allocation3], 0  ;;  %s4836_s0 = inlined_call_operand.hbm [shape: bf16[128,896], index: 0, kind: input, shape index: {}]   ;;  %s4837_s1 = inlined_call_operand.hbm [shape: bf16[896,512], index: 1, kind: input, shape index: {}]   ;;  %s4838_s2 = inlined_call_operand.vmem [shape: f32[128,1], index: 2, kind: input, shape index: {}]   ;;  %s4839_s3 = inlined_call_operand.vmem [shape: f32[32,512], index: 3, kind: input, shape index: {}]   ;;  %s4840_s4 = inlined_call_operand.hbm [shape: f32[32,512], index: 4, kind: output, shape index: {0}]   ;;  %s4841_s5 = inlined_call_operand.hbm [shape: f32[32,512], index: 5, kind: output, shape index: {1}]  }
   0x1   :  { %12 = vsyncpa [#allocation6], 0 }
   0x2   :  { %13 = vsyncpa [#allocation4], 0 }
   0x3   :  { %14 = vsyncpa [#allocation9], 0  ;;  %s4045_s18 = smov [#allocation2]  }
   0x4   :  { %s20_s19 = sshll.u32 %s4045_s18, 4  ;;  %s21_s19 = int_to_ptr.vmem [resolvable:$true] %s20_s19 }
   0x5   :  { %s3965_s20 = scalar_lea.vmem %s21_s19, 7168  ;;  %p3970_p1 = scmp.lt.s32.totalorder %s21_s19, %s21_s19 }
   0x6   :  { %p3966_p0 = scmp.ne.s32.totalorder %s21_s19, %s3965_s20  ;;  %p3971_p2 = scmp.lt.s32.totalorder %s3965_s20, %s3965_s20 }
   0x8   :  { %p3972_p3 = por %p3971_p2, %p3970_p1 }
   0xa   :  { %p3973_p4 = pnand %p3972_p3, %p3966_p0 }
   0xc   :  { %3976 = shalt.err (!%p3973_p4)
}
   0xd   :  { %s4046_s21 = smov 448   ;;  %s4047_s22 = smov 28  }
   0xe   :  { %26 = dma.hbm_to_vmem [thread:$0]  %s4836_s0, 7168, %s21_s19, [#allocation3], %s4046_s21, %s4046_s21, %s4047_s22  }
   0xf   :  { %s4048_s25 = smov [#allocation5]  }
  0x10   :  { %s32_s26 = sshll.u32 %s4048_s25, 4  ;;  %s33_s26 = int_to_ptr.vmem [resolvable:$true] %s32_s26 }
  0x11   :  { %s3985_s27 = scalar_lea.vmem %s33_s26, 28672  ;;  %p3990_p6 = scmp.lt.s32.totalorder %s33_s26, %s33_s26 }
  0x12   :  { %p3986_p5 = scmp.ne.s32.totalorder %s33_s26, %s3985_s27  ;;  %p3991_p7 = scmp.lt.s32.totalorder %s3985_s27, %s3985_s27 }
  0x14   :  { %p3992_p8 = por %p3991_p7, %p3990_p6 }
  0x16   :  { %p3993_p9 = pnand %p3992_p8, %p3986_p5 }
  0x18   :  { %3996 = shalt.err (!%p3993_p9)
}
  0x19   :  { %s4049_s28 = smov 256   ;;  %s4050_s29 = smov 16  }
  0x1a   :  { %38 = dma.hbm_to_vmem [thread:$0]  %s4837_s1, 28672, %s33_s26, [#allocation6], %s4049_s28, %s4049_s28, %s4050_s29  }
  0x1b   :  { %4037 = dma.done.wait [#allocation3], 7168  }
  0x1c   :  { %4038 = vsyncadd [#allocation3], 4294960128 }
  0x1d   :  { %4039 = dma.done.wait [#allocation6], 28672  }
  0x1e   :  { %4040 = vsyncadd [#allocation6], 4294938624  ;;  %v3361_v0 = vld [vmem:[#allocation5 + $0xe4] ss:$16 sps:$4 sm:$0xff]   ;;  %v4051_v2 = vmov 0   ;;  %s4052_s13 = smov [#allocation8]  }
  0x1f   :  { %v3363_v1 = vld [vmem:[#allocation5 + $0x2e4] ss:$16 sps:$4 sm:$0xff]   ;;  %3359 = vset.pattern.permute.xlu0 %v4051_v2  ;;  %3360 = vset.pattern.permute.xlu1 %v4051_v2  ;;  %v3365_v3 = vld [vmem:[#allocation5 + $0xe0] ss:$16 sps:$4 sm:$0xff]   ;;  %v3462_v52 = vld [vmem:[#allocation2 + $0xc] ss:$28 sps:$4 sm:$0xff]  }
  0x20   :  { %1842 = vmatprep.subr.bf16.mxu0 %v3361_v0  ;;  %v3366_v4 = vld [vmem:[#allocation5 + $0x2e0] ss:$16 sps:$4 sm:$0xff]   ;;  %1955 = vmatprep.subr.bf16.mxu1 %v3363_v1  ;;  %v3367_v5 = vld [vmem:[#allocation5 + $0xc4] ss:$16 sps:$4 sm:$0xff]  }
  0x21   :  { %1843 = vmatpush1.bf16.msra.mxu0 %v3365_v3  ;;  %1956 = vmatpush1.bf16.msra.mxu1 %v3366_v4  ;;  %v3369_v6 = vld [vmem:[#allocation5 + $0x2c4] ss:$16 sps:$4 sm:$0xff]   ;;  %v3371_v7 = vld [vmem:[#allocation5 + $0xc0] ss:$16 sps:$4 sm:$0xff]  }
  0x22   :  { %1844 = vmatprep.subr.bf16.mxu0 %v3367_v5  ;;  %v3372_v8 = vld [vmem:[#allocation5 + $0x2c0] ss:$16 sps:$4 sm:$0xff]   ;;  %1957 = vmatprep.subr.bf16.mxu1 %v3369_v6  ;;  %v3373_v9 = vld [vmem:[#allocation5 + $0xa4] ss:$16 sps:$4 sm:$0xff]  }
  0x23   :  { %v3375_v10 = vld [vmem:[#allocation5 + $0x2a4] ss:$16 sps:$4 sm:$0xff]   ;;  %v3377_v11 = vld [vmem:[#allocation5 + $0xa0] ss:$16 sps:$4 sm:$0xff]   ;;  %1987 = vmatprep.mubr.bf16.mxu1 %v3462_v52 }
  0x24   :  { %v3378_v12 = vld [vmem:[#allocation5 + $0x2a0] ss:$16 sps:$4 sm:$0xff]   ;;  %v3379_v13 = vld [vmem:[#allocation5 + $0x84] ss:$16 sps:$4 sm:$0xff]  }
  0x25   :  { %1845 = vmatpush1.bf16.msra.mxu0 %v3371_v7  ;;  %1958 = vmatpush1.bf16.msra.mxu1 %v3372_v8  ;;  %v3381_v14 = vld [vmem:[#allocation5 + $0x284] ss:$16 sps:$4 sm:$0xff]   ;;  %v3383_v15 = vld [vmem:[#allocation5 + $0x80] ss:$16 sps:$4 sm:$0xff]  }
  0x26   :  { %1846 = vmatprep.subr.bf16.mxu0 %v3373_v9  ;;  %1959 = vmatprep.subr.bf16.mxu1 %v3375_v10  ;;  %v3384_v16 = vld [vmem:[#allocation5 + $0x280] ss:$16 sps:$4 sm:$0xff]   ;;  %v3385_v17 = vld [vmem:[#allocation5 + $0x64] ss:$16 sps:$4 sm:$0xff]  }
  0x27   :  { %v3387_v18 = vld [vmem:[#allocation5 + $0x264] ss:$16 sps:$4 sm:$0xff]   ;;  %v3389_v19 = vld [vmem:[#allocation5 + $0x60] ss:$16 sps:$4 sm:$0xff]  }
  0x28   :  { %v3390_v20 = vld [vmem:[#allocation5 + $0x260] ss:$16 sps:$4 sm:$0xff]   ;;  %v3391_v21 = vld [vmem:[#allocation5 + $0x44] ss:$16 sps:$4 sm:$0xff]  }
  0x29   :  { %1847 = vmatpush1.bf16.msra.mxu0 %v3377_v11  ;;  %1960 = vmatpush1.bf16.msra.mxu1 %v3378_v12  ;;  %v3393_v22 = vld [vmem:[#allocation5 + $0x244] ss:$16 sps:$4 sm:$0xff]   ;;  %v3395_v23 = vld [vmem:[#allocation5 + $0x40] ss:$16 sps:$4 sm:$0xff]   ;;  %v3472_v11 = vld [vmem:[#allocation2 + $0x3c] ss:$28 sps:$4 sm:$0xff]  }
  0x2a   :  { %1848 = vmatprep.subr.bf16.mxu0 %v3379_v13  ;;  %1961 = vmatprep.subr.bf16.mxu1 %v3381_v14  ;;  %v3396_v24 = vld [vmem:[#allocation5 + $0x240] ss:$16 sps:$4 sm:$0xff]   ;;  %v3397_v25 = vld [vmem:[#allocation5 + $0x24] ss:$16 sps:$4 sm:$0xff]  }
  0x2b   :  { %v3399_v26 = vld [vmem:[#allocation5 + $0x224] ss:$16 sps:$4 sm:$0xff]   ;;  %v3401_v27 = vld [vmem:[#allocation5 + $0x20] ss:$16 sps:$4 sm:$0xff]  }
  0x2c   :  { %v3402_v28 = vld [vmem:[#allocation5 + $0x220] ss:$16 sps:$4 sm:$0xff]   ;;  %v3403_v29 = vld [vmem:[#allocation5 + $0x4] ss:$16 sps:$4 sm:$0xff]  }
  0x2d   :  { %1849 = vmatpush1.bf16.msra.mxu0 %v3383_v15  ;;  %1962 = vmatpush1.bf16.msra.mxu1 %v3384_v16  ;;  %v3405_v30 = vld [vmem:[#allocation5 + $0x204] ss:$16 sps:$4 sm:$0xff]   ;;  %v3407_v31 = vld [vmem:[#allocation5] ss:$16 sps:$4 sm:$0xff]  }
  0x2e   :  { %1850 = vmatprep.subr.bf16.mxu0 %v3385_v17  ;;  %1963 = vmatprep.subr.bf16.mxu1 %v3387_v18  ;;  %v3408_v32 = vld [vmem:[#allocation5 + $0x200] ss:$16 sps:$4 sm:$0xff]   ;;  %v3409_v33 = vld [vmem:[#allocation5 + $0x1e4] ss:$16 sps:$4 sm:$0xff]  }
  0x2f   :  { %v3411_v34 = vld [vmem:[#allocation5 + $0x3e4] ss:$16 sps:$4 sm:$0xff]   ;;  %v3413_v35 = vld [vmem:[#allocation5 + $0x1e0] ss:$16 sps:$4 sm:$0xff]  }
  0x30   :  { %v3414_v36 = vld [vmem:[#allocation5 + $0x3e0] ss:$16 sps:$4 sm:$0xff]   ;;  %v3415_v37 = vld [vmem:[#allocation5 + $0x1c4] ss:$16 sps:$4 sm:$0xff]  }
  0x31   :  { %1851 = vmatpush1.bf16.msra.mxu0 %v3389_v19  ;;  %1964 = vmatpush1.bf16.msra.mxu1 %v3390_v20  ;;  %v3417_v38 = vld [vmem:[#allocation5 + $0x3c4] ss:$16 sps:$4 sm:$0xff]   ;;  %v3419_v39 = vld [vmem:[#allocation5 + $0x1c0] ss:$16 sps:$4 sm:$0xff]  }
  0x32   :  { %1852 = vmatprep.subr.bf16.mxu0 %v3391_v21  ;;  %1965 = vmatprep.subr.bf16.mxu1 %v3393_v22  ;;  %v3420_v40 = vld [vmem:[#allocation5 + $0x3c0] ss:$16 sps:$4 sm:$0xff]   ;;  %v3421_v41 = vld [vmem:[#allocation5 + $0x1a4] ss:$16 sps:$4 sm:$0xff]  }
  0x33   :  { %v3423_v42 = vld [vmem:[#allocation5 + $0x3a4] ss:$16 sps:$4 sm:$0xff]   ;;  %v3425_v43 = vld [vmem:[#allocation5 + $0x1a0] ss:$16 sps:$4 sm:$0xff]  }
  0x34   :  { %v3426_v44 = vld [vmem:[#allocation5 + $0x3a0] ss:$16 sps:$4 sm:$0xff]   ;;  %v3427_v45 = vld [vmem:[#allocation5 + $0x184] ss:$16 sps:$4 sm:$0xff]  }
  0x35   :  { %1853 = vmatpush1.bf16.msra.mxu0 %v3395_v23  ;;  %1966 = vmatpush1.bf16.msra.mxu1 %v3396_v24  ;;  %v3429_v46 = vld [vmem:[#allocation5 + $0x384] ss:$16 sps:$4 sm:$0xff]   ;;  %v3431_v47 = vld [vmem:[#allocation5 + $0x180] ss:$16 sps:$4 sm:$0xff]   ;;  %v3489_v23 = vld [vmem:[#allocation2 + $0x7c] ss:$28 sps:$4 sm:$0xff]  }
  0x36   :  { %1854 = vmatprep.subr.bf16.mxu0 %v3397_v25  ;;  %1967 = vmatprep.subr.bf16.mxu1 %v3399_v26  ;;  %v3432_v48 = vld [vmem:[#allocation5 + $0x380] ss:$16 sps:$4 sm:$0xff]   ;;  %v3433_v49 = vld [vmem:[#allocation5 + $0x164] ss:$16 sps:$4 sm:$0xff]  }
  0x37   :  { %v3459_v50 = vld [vmem:[#allocation2 + $0x4] ss:$28 sps:$4 sm:$0xff]   ;;  %v3476_v18 = vld [vmem:[#allocation2 + $0x38] ss:$28 sps:$4 sm:$0xff]  }
  0x38   :  { %v3435_v51 = vld [vmem:[#allocation5 + $0x364] ss:$16 sps:$4 sm:$0xff]   ;;  %1874 = vmatprep.mubr.bf16.mxu0 %v3459_v50  ;;  %v3437_v53 = vld [vmem:[#allocation5 + $0x160] ss:$16 sps:$4 sm:$0xff]  }
  0x39   :  { %1855 = vmatpush1.bf16.msra.mxu0 %v3401_v27  ;;  %1968 = vmatpush1.bf16.msra.mxu1 %v3402_v28  ;;  %v3438_v54 = vld [vmem:[#allocation5 + $0x360] ss:$16 sps:$4 sm:$0xff]   ;;  %v3439_v55 = vld [vmem:[#allocation5 + $0x144] ss:$16 sps:$4 sm:$0xff]  }
  0x3a   :  { %1856 = vmatprep.subr.bf16.mxu0 %v3403_v29  ;;  %1969 = vmatprep.subr.bf16.mxu1 %v3405_v30  ;;  %v3441_v56 = vld [vmem:[#allocation5 + $0x344] ss:$16 sps:$4 sm:$0xff]   ;;  %v3443_v57 = vld [vmem:[#allocation5 + $0x140] ss:$16 sps:$4 sm:$0xff]  }
  0x3b   :  { %v3444_v58 = vld [vmem:[#allocation5 + $0x340] ss:$16 sps:$4 sm:$0xff]   ;;  %v3445_v59 = vld [vmem:[#allocation5 + $0x124] ss:$16 sps:$4 sm:$0xff]  }
  0x3c   :  { %v3447_v60 = vld [vmem:[#allocation5 + $0x324] ss:$16 sps:$4 sm:$0xff]   ;;  %v3449_v61 = vld [vmem:[#allocation5 + $0x120] ss:$16 sps:$4 sm:$0xff]  }
  0x3d   :  { %1857 = vmatpush1.bf16.msra.mxu0 %v3407_v31  ;;  %1970 = vmatpush1.bf16.msra.mxu1 %v3408_v32  ;;  %v3450_v62 = vld [vmem:[#allocation5 + $0x320] ss:$16 sps:$4 sm:$0xff]   ;;  %v3451_v63 = vld [vmem:[#allocation5 + $0x104] ss:$16 sps:$4 sm:$0xff]  }
  0x3e   :  { %1858 = vmatprep.subr.bf16.mxu0 %v3409_v33  ;;  %1971 = vmatprep.subr.bf16.mxu1 %v3411_v34  ;;  %v3453_v0 = vld [vmem:[#allocation5 + $0x304] ss:$16 sps:$4 sm:$0xff]   ;;  %v3455_v1 = vld [vmem:[#allocation5 + $0x100] ss:$16 sps:$4 sm:$0xff]   ;;  %v3502_v33 = vld [vmem:[#allocation2 + $0xac] ss:$28 sps:$4 sm:$0xff]  }
  0x3f   :  { %v3456_v3 = vld [vmem:[#allocation5 + $0x300] ss:$16 sps:$4 sm:$0xff]   ;;  %v3465_v4 = vld [vmem:[#allocation5 + $0x4e4] ss:$16 sps:$4 sm:$0xff]  }
  0x40   :  { %v3468_v5 = vld [vmem:[#allocation5 + $0x6e4] ss:$16 sps:$4 sm:$0xff]   ;;  %v3457_v6 = vld [vmem:[#allocation2] ss:$28 sps:$4 sm:$0xff]   ;;  %v3491_v27 = vld [vmem:[#allocation2 + $0x70] ss:$28 sps:$4 sm:$0xff]  }
  0x41   :  { %1859 = vmatpush2.bf16.msra.mxu0 %v3413_v35  ;;  %1972 = vmatpush2.bf16.msra.mxu1 %v3414_v36  ;;  %v3460_v7 = vld [vmem:[#allocation2 + $0x8] ss:$28 sps:$4 sm:$0xff]   ;;  %v3463_v8 = vld [vmem:[#allocation5 + $0x4e0] ss:$16 sps:$4 sm:$0xff]   ;;  %v3492_v29 = vld [vmem:[#allocation2 + $0x78] ss:$28 sps:$4 sm:$0xff]  }
  0x42   :  { %1860 = vmatprep.subr.bf16.mxu0 %v3415_v37  ;;  %1973 = vmatprep.subr.bf16.mxu1 %v3417_v38  ;;  %v3466_v9 = vld [vmem:[#allocation5 + $0x6e0] ss:$16 sps:$4 sm:$0xff]   ;;  %v3471_v10 = vld [vmem:[#allocation5 + $0x4c4] ss:$16 sps:$4 sm:$0xff]  }
  0x43   :  { %v3474_v12 = vld [vmem:[#allocation2 + $0x44] ss:$28 sps:$4 sm:$0xff]   ;;  %v3487_v22 = vld [vmem:[#allocation2 + $0x74] ss:$28 sps:$4 sm:$0xff]  }
  0x44   :  { %v3483_v13 = vld [vmem:[#allocation5 + $0x6c4] ss:$16 sps:$4 sm:$0xff]   ;;  %v3469_v14 = vld [vmem:[#allocation5 + $0x4c0] ss:$16 sps:$4 sm:$0xff]  }
  0x45   :  { %1861 = vmatpush2.bf16.msra.mxu0 %v3419_v39  ;;  %1974 = vmatpush2.bf16.msra.mxu1 %v3420_v40  ;;  %v3480_v15 = vld [vmem:[#allocation5 + $0x4a4] ss:$16 sps:$4 sm:$0xff]   ;;  %v3481_v16 = vld [vmem:[#allocation5 + $0x6c0] ss:$16 sps:$4 sm:$0xff]  }
  0x46   :  { %1862 = vmatprep.subr.bf16.mxu0 %v3421_v41  ;;  %1975 = vmatprep.subr.bf16.mxu1 %v3423_v42  ;;  %v3498_v17 = vld [vmem:[#allocation5 + $0x6a4] ss:$16 sps:$4 sm:$0xff]   ;;  %v3477_v19 = vld [vmem:[#allocation2 + $0x40] ss:$28 sps:$4 sm:$0xff]   ;;  %v3507_v41 = vld [vmem:[#allocation2 + $0xb0] ss:$28 sps:$4 sm:$0xff]  }
  0x47   :  { %v3478_v20 = vld [vmem:[#allocation5 + $0x4a0] ss:$16 sps:$4 sm:$0xff]   ;;  %v3486_v21 = vld [vmem:[#allocation5 + $0x484] ss:$16 sps:$4 sm:$0xff]  }
  0x48   :  { %v3496_v24 = vld [vmem:[#allocation5 + $0x6a0] ss:$16 sps:$4 sm:$0xff]   ;;  %v3513_v25 = vld [vmem:[#allocation5 + $0x684] ss:$16 sps:$4 sm:$0xff]  }
  0x49   :  { %1863 = vmatpush2.bf16.msra.mxu0 %v3425_v43  ;;  %1976 = vmatpush2.bf16.msra.mxu1 %v3426_v44  ;;  %v3484_v26 = vld [vmem:[#allocation5 + $0x480] ss:$16 sps:$4 sm:$0xff]   ;;  %v3495_v28 = vld [vmem:[#allocation5 + $0x464] ss:$16 sps:$4 sm:$0xff]  }
  0x4a   :  { %1864 = vmatprep.subr.bf16.mxu0 %v3427_v45  ;;  %1977 = vmatprep.subr.bf16.mxu1 %v3429_v46  ;;  %v3511_v30 = vld [vmem:[#allocation5 + $0x680] ss:$16 sps:$4 sm:$0xff]   ;;  %v3501_v32 = vld [vmem:[#allocation5 + $0x444] ss:$16 sps:$4 sm:$0xff]   ;;  %v3519_v45 = vld [vmem:[#allocation2 + $0xec] ss:$28 sps:$4 sm:$0xff]  }
  0x4b   :  { %v3493_v31 = vld [vmem:[#allocation5 + $0x460] ss:$16 sps:$4 sm:$0xff]   ;;  %v3528_v35 = vld [vmem:[#allocation5 + $0x664] ss:$16 sps:$4 sm:$0xff]  }
  0x4c   :  { %v3504_v34 = vld [vmem:[#allocation2 + $0xb4] ss:$28 sps:$4 sm:$0xff]   ;;  %v3506_v40 = vld [vmem:[#allocation2 + $0xa8] ss:$28 sps:$4 sm:$0xff]  }
  0x4d   :  { %1865 = vmatpush2.bf16.msra.mxu0 %v3431_v47  ;;  %1978 = vmatpush2.bf16.msra.mxu1 %v3432_v48  ;;  %v3526_v36 = vld [vmem:[#allocation5 + $0x660] ss:$16 sps:$4 sm:$0xff]   ;;  %v3543_v38 = vld [vmem:[#allocation5 + $0x644] ss:$16 sps:$4 sm:$0xff]  }
  0x4e   :  { %1866 = vmatprep.subr.bf16.mxu0 %v3433_v49  ;;  %1979 = vmatprep.subr.bf16.mxu1 %v3435_v51  ;;  %v3499_v37 = vld [vmem:[#allocation5 + $0x440] ss:$16 sps:$4 sm:$0xff]   ;;  %v3510_v39 = vld [vmem:[#allocation5 + $0x424] ss:$16 sps:$4 sm:$0xff]  }
  0x4f   :  { %v3508_v42 = vld [vmem:[#allocation5 + $0x420] ss:$16 sps:$4 sm:$0xff]   ;;  %v3516_v43 = vld [vmem:[#allocation5 + $0x404] ss:$16 sps:$4 sm:$0xff]  }
  0x50   :  { %v3517_v44 = vld [vmem:[#allocation2 + $0xe4] ss:$28 sps:$4 sm:$0xff]  }
  0x51   :  { %1867 = vmatpush2.bf16.msra.mxu0 %v3437_v53  ;;  %1980 = vmatpush2.bf16.msra.mxu1 %v3438_v54  ;;  %v3541_v46 = vld [vmem:[#allocation5 + $0x640] ss:$16 sps:$4 sm:$0xff]   ;;  %v3558_v47 = vld [vmem:[#allocation5 + $0x624] ss:$16 sps:$4 sm:$0xff]  }
  0x52   :  { %1868 = vmatprep.subr.bf16.mxu0 %v3439_v55  ;;  %1981 = vmatprep.subr.bf16.mxu1 %v3441_v56  ;;  %v3514_v48 = vld [vmem:[#allocation5 + $0x400] ss:$16 sps:$4 sm:$0xff]   ;;  %v3525_v50 = vld [vmem:[#allocation5 + $0x5e4] ss:$16 sps:$4 sm:$0xff]   ;;  %v4094_v55 = vld [vmem:[#allocation2 + $0x11c] ss:$28 sps:$4 sm:$0xff]  }
  0x53   :  { %v3521_v49 = vld [vmem:[#allocation2 + $0xe0] ss:$28 sps:$4 sm:$0xff]   ;;  %v3522_v51 = vld [vmem:[#allocation2 + $0xe8] ss:$28 sps:$4 sm:$0xff]  }
  0x54   :  { %v3556_v52 = vld [vmem:[#allocation5 + $0x620] ss:$16 sps:$4 sm:$0xff]   ;;  %v3531_v54 = vld [vmem:[#allocation5 + $0x5c4] ss:$16 sps:$4 sm:$0xff]  }
  0x55   :  { %1869 = vmatpush2.bf16.msra.mxu0 %v3443_v57  ;;  %1982 = vmatpush2.bf16.msra.mxu1 %v3444_v58  ;;  %v3523_v53 = vld [vmem:[#allocation5 + $0x5e0] ss:$16 sps:$4 sm:$0xff]   ;;  %v3573_v57 = vld [vmem:[#allocation5 + $0x604] ss:$16 sps:$4 sm:$0xff]  }
  0x56   :  { %1870 = vmatprep.subr.bf16.mxu0 %v3445_v59  ;;  %1983 = vmatprep.subr.bf16.mxu1 %v3447_v60  ;;  %v4096_v56 = vld [vmem:[#allocation2 + $0x124] ss:$28 sps:$4 sm:$0xff]   ;;  %v3586_v60 = vld [vmem:[#allocation5 + $0x2ec] ss:$16 sps:$4 sm:$0xff]  }
  0x57   :  { %v3571_v58 = vld [vmem:[#allocation5 + $0x600] ss:$16 sps:$4 sm:$0xff]  }
  0x58   :  { %v3529_v59 = vld [vmem:[#allocation5 + $0x5c0] ss:$16 sps:$4 sm:$0xff]  }
  0x59   :  { %1871 = vmatpush2.bf16.msra.mxu0 %v3449_v61  ;;  %1984 = vmatpush2.bf16.msra.mxu1 %v3450_v62  ;;  %v4100_v61 = vld [vmem:[#allocation2 + $0x118] ss:$28 sps:$4 sm:$0xff]  }
  0x5a   :  { %1872 = vmatprep.subr.bf16.mxu0 %v3451_v63  ;;  %1985 = vmatprep.subr.bf16.mxu1 %v3453_v0  ;;  %v3540_v62 = vld [vmem:[#allocation5 + $0x5a4] ss:$16 sps:$4 sm:$0xff]   ;;  %v4102_v63 = vld [vmem:[#allocation2 + $0x120] ss:$28 sps:$4 sm:$0xff]  }
  0x5b   :  { %v3538_v0 = vld [vmem:[#allocation5 + $0x5a0] ss:$16 sps:$4 sm:$0xff]  }
  0x5d   :  { %1873 = vmatpush2.bf16.msra.mxu0 %v3455_v1  ;;  %1986 = vmatpush2.bf16.msra.mxu1 %v3456_v3  ;;  %v3546_v1 = vld [vmem:[#allocation5 + $0x584] ss:$16 sps:$4 sm:$0xff]  }
  0x5e   :  { %2068 = vmatprep.subr.bf16.mxu0 %v3465_v4  ;;  %2181 = vmatprep.subr.bf16.mxu1 %v3468_v5  ;;  %v338_v3 = vld [vmem:[%s4838_s2] sm:$0xff]  ;;  %v4107_v4 = vld [vmem:[#allocation2 + $0x154] ss:$28 sps:$4 sm:$0xff]   ;;  %v4109_v5 = vld [vmem:[#allocation2 + $0x15c] ss:$28 sps:$4 sm:$0xff]  }
  0x5f   :  { %356 = vperm.xlu0 %3359, %v338_v3   ;;  %v4191_v3 = vld [vmem:[#allocation2 + $0xbc] ss:$28 sps:$4 sm:$0xff]  }
  0x60   :  { %1875 = vmatmul.mubr.bf16.vlgmr.msra.gmra.mxu0 %v3457_v6  ;;  %1988 = vmatmul.mubr.bf16.vlgmr.msra.gmra.mxu1 %v3460_v7  ;;  %v3544_v6 = vld [vmem:[#allocation5 + $0x580] ss:$16 sps:$4 sm:$0xff]   ;;  %v3555_v7 = vld [vmem:[#allocation5 + $0x564] ss:$16 sps:$4 sm:$0xff]  }
  0x61   :  { %2069 = vmatpush1.bf16.msra.mxu0 %v3463_v8  ;;  %2182 = vmatpush1.bf16.msra.mxu1 %v3466_v9  ;;  %v339_v8 = vld [vmem:[%s4838_s2 + $0x8] sm:$0xff] }
  0x62   :  { %2070 = vmatprep.subr.bf16.mxu0 %v3471_v10  ;;  %1884 = vmatprep.mubr.bf16.mxu0 %v3472_v11  ;;  %v4118_v9 = vld [vmem:[#allocation2 + $0x150] ss:$28 sps:$4 sm:$0xff]   ;;  %v4120_v10 = vld [vmem:[#allocation2 + $0x158] ss:$28 sps:$4 sm:$0xff]  }
  0x63   :  { %1997 = vmatprep.mubr.bf16.mxu1 %v3474_v12  ;;  %2183 = vmatprep.subr.bf16.mxu1 %v3483_v13  ;;  %v3553_v11 = vld [vmem:[#allocation5 + $0x560] ss:$16 sps:$4 sm:$0xff]   ;;  %v4122_v12 = vld [vmem:[#allocation2 + $0x18c] ss:$28 sps:$4 sm:$0xff]  }
  0x64   :  { %361 = vperm.xlu0 %3359, %v339_v8   ;;  %v340_v13 = vld [vmem:[%s4838_s2 + $0x10] sm:$0xff]  ;;  %v3634_v8 = vld [vmem:[#allocation5 + $0x22c] ss:$16 sps:$4 sm:$0xff]  }
  0x65   :  { %2071 = vmatpush1.bf16.msra.mxu0 %v3469_v14  ;;  %2184 = vmatpush1.bf16.msra.mxu1 %v3481_v16  ;;  %v3561_v14 = vld [vmem:[#allocation5 + $0x544] ss:$16 sps:$4 sm:$0xff]   ;;  %v3559_v16 = vld [vmem:[#allocation5 + $0x540] ss:$16 sps:$4 sm:$0xff]  }
  0x66   :  { %2072 = vmatprep.subr.bf16.mxu0 %v3480_v15  ;;  %2185 = vmatprep.subr.bf16.mxu1 %v3498_v17  ;;  %v4127_v15 = vld [vmem:[#allocation2 + $0x194] ss:$28 sps:$4 sm:$0xff]  }
  0x67   :  { %366 = vperm.xlu1 %3360, %v340_v13   ;;  %v3570_v17 = vld [vmem:[#allocation5 + $0x524] ss:$16 sps:$4 sm:$0xff]   ;;  %v4199_v13 = vld [vmem:[#allocation2 + $0xc0] ss:$28 sps:$4 sm:$0xff]  }
  0x68   :  { %1885 = vmatmul.mubr.bf16.gmra.mxu0 %v3476_v18  ;;  %1998 = vmatmul.mubr.bf16.gmra.mxu1 %v3477_v19  ;;  %v341_v18 = vld [vmem:[%s4838_s2 + $0x18] sm:$0xff]  ;;  %v4136_v19 = vld [vmem:[#allocation2 + $0x188] ss:$28 sps:$4 sm:$0xff]  }
  0x69   :  { %2073 = vmatpush1.bf16.msra.mxu0 %v3478_v20  ;;  %1894 = vmatprep.mubr.bf16.mxu0 %v3487_v22  ;;  %v4138_v20 = vld [vmem:[#allocation2 + $0x190] ss:$28 sps:$4 sm:$0xff]  }
  0x6a   :  { %2074 = vmatprep.subr.bf16.mxu0 %v3486_v21  ;;  %2007 = vmatprep.mubr.bf16.mxu1 %v3489_v23  ;;  %v3568_v21 = vld [vmem:[#allocation5 + $0x520] ss:$16 sps:$4 sm:$0xff]  }
  0x6b   :  { %2186 = vmatpush1.bf16.msra.mxu1 %v3496_v24  ;;  %371 = vperm.xlu1 %3360, %v341_v18   ;;  %v4140_v22 = vld [vmem:[#allocation2 + $0x14] ss:$28 sps:$4 sm:$0xff]   ;;  %v342_v23 = vld [vmem:[%s4838_s2 + $0x20] sm:$0xff]  ;;  %v3637_v18 = vld [vmem:[#allocation5 + $0xc] ss:$16 sps:$4 sm:$0xff]  }
  0x6c   :  { %2187 = vmatprep.subr.bf16.mxu1 %v3513_v25  ;;  %v3576_v24 = vld [vmem:[#allocation5 + $0x504] ss:$16 sps:$4 sm:$0xff]   ;;  %376 = vperm.xlu0 %3359, %v342_v23   ;;  %v3574_v25 = vld [vmem:[#allocation5 + $0x500] ss:$16 sps:$4 sm:$0xff]  }
  0x6d   :  { %2075 = vmatpush1.bf16.msra.mxu0 %v3484_v26  ;;  %v4148_v26 = vld [vmem:[#allocation2 + $0x10] ss:$28 sps:$4 sm:$0xff]   ;;  %v350_v23 = vld [vmem:[%s4838_s2 + $0x60] sm:$0xff] }
  0x6e   :  { %2076 = vmatprep.subr.bf16.mxu0 %v3495_v28  ;;  %v343_v28 = vld [vmem:[%s4838_s2 + $0x28] sm:$0xff] }
  0x6f   :  { %2188 = vmatpush1.bf16.msra.mxu1 %v3511_v30  ;;  %381 = vperm.xlu1 %3360, %v343_v28   ;;  %v3581_v30 = vld [vmem:[#allocation5 + $0xe8] ss:$16 sps:$4 sm:$0xff]   ;;  %v3647_v28 = vld [vmem:[#allocation5 + $0x1ec] ss:$16 sps:$4 sm:$0xff]  }
  0x70   :  { %1895 = vmatmul.mubr.bf16.gmra.mxu0 %v3491_v27  ;;  %2008 = vmatmul.mubr.bf16.gmra.mxu1 %v3492_v29  ;;  %v3583_v27 = vld [vmem:[#allocation5 + $0xec] ss:$16 sps:$4 sm:$0xff]   ;;  %v4154_v29 = vld [vmem:[#allocation2 + $0x18] ss:$28 sps:$4 sm:$0xff]  }
  0x71   :  { %2077 = vmatpush1.bf16.msra.mxu0 %v3493_v31  ;;  %1904 = vmatprep.mubr.bf16.mxu0 %v3502_v33  ;;  %v3584_v31 = vld [vmem:[#allocation5 + $0x2e8] ss:$16 sps:$4 sm:$0xff]   ;;  %v344_v33 = vld [vmem:[%s4838_s2 + $0x30] sm:$0xff] }
  0x72   :  { %2078 = vmatprep.subr.bf16.mxu0 %v3501_v32  ;;  %2017 = vmatprep.mubr.bf16.mxu1 %v3504_v34  ;;  %v3589_v32 = vld [vmem:[#allocation5 + $0xcc] ss:$16 sps:$4 sm:$0xff]  }
  0x73   :  { %2189 = vmatprep.subr.bf16.mxu1 %v3528_v35  ;;  %v3592_v34 = vld [vmem:[#allocation5 + $0x2cc] ss:$16 sps:$4 sm:$0xff]   ;;  %386 = vperm.xlu0 %3359, %v344_v33  }
  0x74   :  { %2190 = vmatpush1.bf16.msra.mxu1 %v3526_v36  ;;  %v4159_v35 = vld [vmem:[#allocation2 + $0x4c] ss:$28 sps:$4 sm:$0xff]  }
  0x75   :  { %2079 = vmatpush1.bf16.msra.mxu0 %v3499_v37  ;;  %2191 = vmatprep.subr.bf16.mxu1 %v3543_v38  ;;  %v3587_v36 = vld [vmem:[#allocation5 + $0xc8] ss:$16 sps:$4 sm:$0xff]  }
  0x76   :  { %2080 = vmatprep.subr.bf16.mxu0 %v3510_v39  ;;  %v3590_v37 = vld [vmem:[#allocation5 + $0x2c8] ss:$16 sps:$4 sm:$0xff]   ;;  %v4165_v39 = vld [vmem:[#allocation2 + $0x50] ss:$28 sps:$4 sm:$0xff]  }
  0x77   :  { %v4163_v38 = vld [vmem:[#allocation2 + $0x48] ss:$28 sps:$4 sm:$0xff]  }
  0x78   :  { %1905 = vmatmul.mubr.bf16.gmra.mxu0 %v3506_v40  ;;  %2018 = vmatmul.mubr.bf16.gmra.mxu1 %v3507_v41  ;;  %v3599_v40 = vld [vmem:[#allocation5 + $0xac] ss:$16 sps:$4 sm:$0xff]  }
  0x79   :  { %2081 = vmatpush1.bf16.msra.mxu0 %v3508_v42  ;;  %1914 = vmatprep.mubr.bf16.mxu0 %v3517_v44  ;;  %v3602_v41 = vld [vmem:[#allocation5 + $0x2ac] ss:$16 sps:$4 sm:$0xff]   ;;  %v3600_v44 = vld [vmem:[#allocation5 + $0x2a8] ss:$16 sps:$4 sm:$0xff]  }
  0x7a   :  { %2082 = vmatprep.subr.bf16.mxu0 %v3516_v43  ;;  %2027 = vmatprep.mubr.bf16.mxu1 %v3519_v45  ;;  %v345_v42 = vld [vmem:[%s4838_s2 + $0x38] sm:$0xff]  ;;  %v351_v33 = vld [vmem:[%s4838_s2 + $0x68] sm:$0xff] }
  0x7b   :  { %2192 = vmatpush1.bf16.msra.mxu1 %v3541_v46  ;;  %v3597_v43 = vld [vmem:[#allocation5 + $0xa8] ss:$16 sps:$4 sm:$0xff]   ;;  %391 = vperm.xlu1 %3360, %v345_v42   ;;  %v3605_v45 = vld [vmem:[#allocation5 + $0x8c] ss:$16 sps:$4 sm:$0xff]  }
  0x7c   :  { %2193 = vmatprep.subr.bf16.mxu1 %v3558_v47  ;;  %v3608_v46 = vld [vmem:[#allocation5 + $0x28c] ss:$16 sps:$4 sm:$0xff]   ;;  %v346_v47 = vld [vmem:[%s4838_s2 + $0x40] sm:$0xff] }
  0x7d   :  { %2083 = vmatpush1.bf16.msra.mxu0 %v3514_v48  ;;  %v4175_v48 = vld [vmem:[#allocation2 + $0x84] ss:$28 sps:$4 sm:$0xff]   ;;  %396 = vperm.xlu0 %3359, %v346_v47   ;;  %v4220_v42 = vld [vmem:[#allocation2 + $0x12c] ss:$28 sps:$4 sm:$0xff]  }
  0x7e   :  { %2084 = vmatprep.subr.bf16.mxu0 %v3525_v50  ;;  %v3606_v50 = vld [vmem:[#allocation5 + $0x288] ss:$16 sps:$4 sm:$0xff]   ;;  %v3666_v47 = vld [vmem:[#allocation5 + $0x3ac] ss:$16 sps:$4 sm:$0xff]  }
  0x7f   :  { %2194 = vmatpush1.bf16.msra.mxu1 %v3556_v52  ;;  %v4179_v52 = vld [vmem:[#allocation2 + $0x80] ss:$28 sps:$4 sm:$0xff]  }
  0x80   :  { %1915 = vmatmul.mubr.bf16.gmra.mxu0 %v3521_v49  ;;  %2028 = vmatmul.mubr.bf16.gmra.mxu1 %v3522_v51  ;;  %v3603_v49 = vld [vmem:[#allocation5 + $0x88] ss:$16 sps:$4 sm:$0xff]   ;;  %v3615_v51 = vld [vmem:[#allocation5 + $0x6c] ss:$16 sps:$4 sm:$0xff]  }
  0x81   :  { %2085 = vmatpush2.bf16.msra.mxu0 %v3523_v53  ;;  %1924 = vmatprep.mubr.bf16.mxu0 %v4094_v55  ;;  %v3618_v53 = vld [vmem:[#allocation5 + $0x26c] ss:$16 sps:$4 sm:$0xff]  }
  0x82   :  { %2086 = vmatprep.subr.bf16.mxu0 %v3531_v54  ;;  %2037 = vmatprep.mubr.bf16.mxu1 %v4096_v56  ;;  %v4183_v54 = vld [vmem:[#allocation2 + $0x88] ss:$28 sps:$4 sm:$0xff]  }
  0x83   :  { %2195 = vmatprep.subr.bf16.mxu1 %v3573_v57  ;;  %v347_v57 = vld [vmem:[%s4838_s2 + $0x48] sm:$0xff] }
  0x84   :  { %2196 = vmatpush1.bf16.msra.mxu1 %v3571_v58  ;;  %v3613_v58 = vld [vmem:[#allocation5 + $0x68] ss:$16 sps:$4 sm:$0xff]   ;;  %401 = vperm.xlu1 %3360, %v347_v57   ;;  %v3669_v57 = vld [vmem:[#allocation5 + $0x18c] ss:$16 sps:$4 sm:$0xff]  }
  0x85   :  { %2087 = vmatpush2.bf16.msra.mxu0 %v3529_v59  ;;  %2407 = vmatprep.subr.bf16.mxu1 %v3586_v60  ;;  %v3616_v59 = vld [vmem:[#allocation5 + $0x268] ss:$16 sps:$4 sm:$0xff]   ;;  %v3621_v60 = vld [vmem:[#allocation5 + $0x4c] ss:$16 sps:$4 sm:$0xff]  }
  0x86   :  { %2088 = vmatprep.subr.bf16.mxu0 %v3540_v62  ;;  %v3624_v62 = vld [vmem:[#allocation5 + $0x24c] ss:$16 sps:$4 sm:$0xff]  }
  0x88   :  { %1925 = vmatmul.mubr.bf16.gmra.mxu0 %v4100_v61  ;;  %2038 = vmatmul.mubr.bf16.gmra.mxu1 %v4102_v63 }
  0x89   :  { %2089 = vmatpush2.bf16.msra.mxu0 %v3538_v0  ;;  %1934 = vmatprep.mubr.bf16.mxu0 %v4107_v4  ;;  %v348_v0 = vld [vmem:[%s4838_s2 + $0x50] sm:$0xff] }
  0x8a   :  { %2090 = vmatprep.subr.bf16.mxu0 %v3546_v1  ;;  %2047 = vmatprep.mubr.bf16.mxu1 %v4109_v5  ;;  %v3619_v1 = vld [vmem:[#allocation5 + $0x48] ss:$16 sps:$4 sm:$0xff]  }
  0x8b   :  { %406 = vperm.xlu0 %3359, %v348_v0   ;;  %v3679_v0 = vld [vmem:[#allocation5 + $0x16c] ss:$16 sps:$4 sm:$0xff]  }
  0x8d   :  { %2091 = vmatpush2.bf16.msra.mxu0 %v3544_v6  ;;  %v3622_v6 = vld [vmem:[#allocation5 + $0x248] ss:$16 sps:$4 sm:$0xff]  }
  0x8e   :  { %2092 = vmatprep.subr.bf16.mxu0 %v3555_v7  ;;  %v3631_v7 = vld [vmem:[#allocation5 + $0x2c] ss:$16 sps:$4 sm:$0xff]  }
  0x8f   :  { %416 = vperm.xlu0 %3359, %v350_v23   ;;  %v3686_v23 = vld [vmem:[#allocation5 + $0x348] ss:$16 sps:$4 sm:$0xff]  }
  0x90   :  { %1935 = vmatmul.mubr.bf16.gmra.mxu0 %v4118_v9  ;;  %2048 = vmatmul.mubr.bf16.gmra.mxu1 %v4120_v10 }
  0x91   :  { %2093 = vmatpush2.bf16.msra.mxu0 %v3553_v11  ;;  %1944 = vmatprep.mubr.bf16.mxu0 %v4122_v12  ;;  %v4197_v11 = vld [vmem:[#allocation2 + $0xb8] ss:$28 sps:$4 sm:$0xff]  }
  0x92   :  { %2094 = vmatprep.subr.bf16.mxu0 %v3561_v14  ;;  %2057 = vmatprep.mubr.bf16.mxu1 %v4127_v15  ;;  %v349_v14 = vld [vmem:[%s4838_s2 + $0x58] sm:$0xff] }
  0x93   :  { %411 = vperm.xlu1 %3360, %v349_v14   ;;  %v3680_v14 = vld [vmem:[#allocation5 + $0x368] ss:$16 sps:$4 sm:$0xff]  }
  0x95   :  { %2095 = vmatpush2.bf16.msra.mxu0 %v3559_v16  ;;  %v3629_v16 = vld [vmem:[#allocation5 + $0x28] ss:$16 sps:$4 sm:$0xff]  }
  0x96   :  { %2096 = vmatprep.subr.bf16.mxu0 %v3570_v17  ;;  %v3632_v17 = vld [vmem:[#allocation5 + $0x228] ss:$16 sps:$4 sm:$0xff]  }
  0x97   :  { %421 = vperm.xlu1 %3360, %v351_v33   ;;  %v3693_v33 = vld [vmem:[#allocation5 + $0x128] ss:$16 sps:$4 sm:$0xff]  }
  0x98   :  { %1945 = vmatmul.mubr.bf16.gmra.mxu0 %v4136_v19  ;;  %2058 = vmatmul.mubr.bf16.gmra.mxu1 %v4138_v20 }
  0x99   :  { %2097 = vmatpush2.bf16.msra.mxu0 %v3568_v21  ;;  %2100 = vmatprep.mubr.bf16.mxu0 %v4140_v22  ;;  %v3640_v21 = vld [vmem:[#allocation5 + $0x20c] ss:$16 sps:$4 sm:$0xff]  }
  0x9a   :  { %2098 = vmatprep.subr.bf16.mxu0 %v3576_v24  ;;  %2213 = vmatprep.mubr.bf16.mxu1 %v4051_v2  ;;  %v4207_v24 = vld [vmem:[#allocation2 + $0xf4] ss:$28 sps:$4 sm:$0xff]  }
  0x9d   :  { %2099 = vmatpush2.bf16.msra.mxu0 %v3574_v25  ;;  %v3635_v25 = vld [vmem:[#allocation5 + $0x8] ss:$16 sps:$4 sm:$0xff]  }
  0x9e   :  { %2294 = vmatprep.subr.bf16.mxu0 %v3583_v27  ;;  %v3638_v27 = vld [vmem:[#allocation5 + $0x208] ss:$16 sps:$4 sm:$0xff]  }
  0xa0   :  { %2101 = vmatmul.mubr.bf16.vlgmr.msra.gmra.mxu0 %v4148_v26  ;;  %2214 = vmatmul.mubr.bf16.vlgmr.msra.gmra.mxu1 %v4154_v29 }
  0xa1   :  { %2295 = vmatpush1.bf16.msra.mxu0 %v3581_v30  ;;  %2408 = vmatpush1.bf16.msra.mxu1 %v3584_v31  ;;  %v3650_v30 = vld [vmem:[#allocation5 + $0x3ec] ss:$16 sps:$4 sm:$0xff]  }
  0xa2   :  { %2296 = vmatprep.subr.bf16.mxu0 %v3589_v32  ;;  %2409 = vmatprep.subr.bf16.mxu1 %v3592_v34  ;;  %v4213_v31 = vld [vmem:[#allocation2 + $0xf0] ss:$28 sps:$4 sm:$0xff]   ;;  %v4215_v32 = vld [vmem:[#allocation2 + $0xf8] ss:$28 sps:$4 sm:$0xff]  }
  0xa3   :  { %2110 = vmatprep.mubr.bf16.mxu0 %v4159_v35  ;;  %2223 = vmatprep.mubr.bf16.mxu1 %v4051_v2  ;;  %v3645_v34 = vld [vmem:[#allocation5 + $0x1e8] ss:$16 sps:$4 sm:$0xff]  }
  0xa5   :  { %2297 = vmatpush1.bf16.msra.mxu0 %v3587_v36  ;;  %2410 = vmatpush1.bf16.msra.mxu1 %v3590_v37  ;;  %v3648_v36 = vld [vmem:[#allocation5 + $0x3e8] ss:$16 sps:$4 sm:$0xff]   ;;  %v3653_v37 = vld [vmem:[#allocation5 + $0x1cc] ss:$16 sps:$4 sm:$0xff]  }
  0xa6   :  { %2298 = vmatprep.subr.bf16.mxu0 %v3599_v40  ;;  %2411 = vmatprep.subr.bf16.mxu1 %v3602_v41  ;;  %v3656_v40 = vld [vmem:[#allocation5 + $0x3cc] ss:$16 sps:$4 sm:$0xff]   ;;  %v3651_v41 = vld [vmem:[#allocation5 + $0x1c8] ss:$16 sps:$4 sm:$0xff]  }
  0xa8   :  { %2111 = vmatmul.mubr.bf16.gmra.mxu0 %v4163_v38  ;;  %2224 = vmatmul.mubr.bf16.gmra.mxu1 %v4165_v39 }
  0xa9   :  { %2299 = vmatpush1.bf16.msra.mxu0 %v3597_v43  ;;  %2412 = vmatpush1.bf16.msra.mxu1 %v3600_v44  ;;  %v3654_v43 = vld [vmem:[#allocation5 + $0x3c8] ss:$16 sps:$4 sm:$0xff]   ;;  %v3663_v44 = vld [vmem:[#allocation5 + $0x1ac] ss:$16 sps:$4 sm:$0xff]  }
  0xaa   :  { %2300 = vmatprep.subr.bf16.mxu0 %v3605_v45  ;;  %2413 = vmatprep.subr.bf16.mxu1 %v3608_v46  ;;  %v352_v45 = vld [vmem:[%s4838_s2 + $0x70] sm:$0xff]  ;;  %v353_v46 = vld [vmem:[%s4838_s2 + $0x78] sm:$0xff] }
  0xab   :  { %2120 = vmatprep.mubr.bf16.mxu0 %v4175_v48  ;;  %2233 = vmatprep.mubr.bf16.mxu1 %v4051_v2 }
  0xac   :  { %426 = vperm.xlu0 %3359, %v352_v45   ;;  %431 = vperm.xlu1 %3360, %v353_v46   ;;  %v3937_v45 = vld [vmem:[#allocation2 + $0x4] ss:$28 sps:$4 sm:$0xff]   ;;  %v3938_v46 = vld [vmem:[#allocation2 + $0xc] ss:$28 sps:$4 sm:$0xff]  }
  0xad   :  { %2301 = vmatpush1.bf16.msra.mxu0 %v3603_v49  ;;  %2414 = vmatpush1.bf16.msra.mxu1 %v3606_v50  ;;  %v4232_v49 = vld [vmem:[#allocation2 + $0x128] ss:$28 sps:$4 sm:$0xff]   ;;  %v4234_v50 = vld [vmem:[#allocation2 + $0x130] ss:$28 sps:$4 sm:$0xff]  }
  0xae   :  { %2302 = vmatprep.subr.bf16.mxu0 %v3615_v51  ;;  %2415 = vmatprep.subr.bf16.mxu1 %v3618_v53  ;;  %v3661_v51 = vld [vmem:[#allocation5 + $0x1a8] ss:$16 sps:$4 sm:$0xff]  }
  0xaf   :  { %v3664_v53 = vld [vmem:[#allocation5 + $0x3a8] ss:$16 sps:$4 sm:$0xff]  }
  0xb0   :  { %2121 = vmatmul.mubr.bf16.gmra.mxu0 %v4179_v52  ;;  %2234 = vmatmul.mubr.bf16.gmra.mxu1 %v4183_v54 }
  0xb1   :  { %2303 = vmatpush1.bf16.msra.mxu0 %v3613_v58  ;;  %2416 = vmatpush1.bf16.msra.mxu1 %v3616_v59  ;;  %v3672_v58 = vld [vmem:[#allocation5 + $0x38c] ss:$16 sps:$4 sm:$0xff]   ;;  %v4236_v59 = vld [vmem:[#allocation2 + $0x164] ss:$28 sps:$4 sm:$0xff]  }
  0xb2   :  { %2304 = vmatprep.subr.bf16.mxu0 %v3621_v60  ;;  %2417 = vmatprep.subr.bf16.mxu1 %v3624_v62  ;;  %v3667_v60 = vld [vmem:[#allocation5 + $0x188] ss:$16 sps:$4 sm:$0xff]  }
  0xb3   :  { %2130 = vmatprep.mubr.bf16.mxu0 %v4191_v3  ;;  %2243 = vmatprep.mubr.bf16.mxu1 %v4051_v2  ;;  %v3670_v62 = vld [vmem:[#allocation5 + $0x388] ss:$16 sps:$4 sm:$0xff]  }
  0xb5   :  { %2305 = vmatpush1.bf16.msra.mxu0 %v3619_v1  ;;  %2418 = vmatpush1.bf16.msra.mxu1 %v3622_v6  ;;  %v3682_v1 = vld [vmem:[#allocation5 + $0x36c] ss:$16 sps:$4 sm:$0xff]  }
  0xb6   :  { %2306 = vmatprep.subr.bf16.mxu0 %v3631_v7  ;;  %2419 = vmatprep.subr.bf16.mxu1 %v3634_v8  ;;  %v4242_v6 = vld [vmem:[#allocation2 + $0x160] ss:$28 sps:$4 sm:$0xff]   ;;  %v4244_v7 = vld [vmem:[#allocation2 + $0x168] ss:$28 sps:$4 sm:$0xff]  }
  0xb7   :  { %v3677_v8 = vld [vmem:[#allocation5 + $0x168] ss:$16 sps:$4 sm:$0xff]  }
  0xb8   :  { %2131 = vmatmul.mubr.bf16.gmra.mxu0 %v4197_v11  ;;  %2244 = vmatmul.mubr.bf16.gmra.mxu1 %v4199_v13 }
  0xb9   :  { %2307 = vmatpush1.bf16.msra.mxu0 %v3629_v16  ;;  %2420 = vmatpush1.bf16.msra.mxu1 %v3632_v17  ;;  %v3685_v16 = vld [vmem:[#allocation5 + $0x14c] ss:$16 sps:$4 sm:$0xff]  }
  0xba   :  { %2308 = vmatprep.subr.bf16.mxu0 %v3637_v18  ;;  %2421 = vmatprep.subr.bf16.mxu1 %v3640_v21  ;;  %v3688_v17 = vld [vmem:[#allocation5 + $0x34c] ss:$16 sps:$4 sm:$0xff]   ;;  %v3683_v21 = vld [vmem:[#allocation5 + $0x148] ss:$16 sps:$4 sm:$0xff]  }
  0xbb   :  { %2140 = vmatprep.mubr.bf16.mxu0 %v4207_v24  ;;  %2253 = vmatprep.mubr.bf16.mxu1 %v4051_v2  ;;  %v4246_v18 = vld [vmem:[#allocation2 + $0x19c] ss:$28 sps:$4 sm:$0xff]  }
  0xbd   :  { %2309 = vmatpush1.bf16.msra.mxu0 %v3635_v25  ;;  %2422 = vmatpush1.bf16.msra.mxu1 %v3638_v27  ;;  %v3695_v25 = vld [vmem:[#allocation5 + $0x12c] ss:$16 sps:$4 sm:$0xff]  }
  0xbe   :  { %2310 = vmatprep.subr.bf16.mxu0 %v3647_v28  ;;  %2423 = vmatprep.subr.bf16.mxu1 %v3650_v30  ;;  %v3698_v27 = vld [vmem:[#allocation5 + $0x32c] ss:$16 sps:$4 sm:$0xff]   ;;  %v4252_v28 = vld [vmem:[#allocation2 + $0x198] ss:$28 sps:$4 sm:$0xff]  }
  0xbf   :  { %v4254_v30 = vld [vmem:[#allocation2 + $0x1a0] ss:$28 sps:$4 sm:$0xff]  }
  0xc0   :  { %2141 = vmatmul.mubr.bf16.gmra.mxu0 %v4213_v31  ;;  %2254 = vmatmul.mubr.bf16.gmra.mxu1 %v4215_v32 }
  0xc1   :  { %2311 = vmatpush2.bf16.msra.mxu0 %v3645_v34  ;;  %2424 = vmatpush2.bf16.msra.mxu1 %v3648_v36  ;;  %v3696_v34 = vld [vmem:[#allocation5 + $0x328] ss:$16 sps:$4 sm:$0xff]   ;;  %v3701_v36 = vld [vmem:[#allocation5 + $0x10c] ss:$16 sps:$4 sm:$0xff]  }
  0xc2   :  { %2312 = vmatprep.subr.bf16.mxu0 %v3653_v37  ;;  %2425 = vmatprep.subr.bf16.mxu1 %v3656_v40  ;;  %v3704_v37 = vld [vmem:[#allocation5 + $0x30c] ss:$16 sps:$4 sm:$0xff]   ;;  %v3699_v40 = vld [vmem:[#allocation5 + $0x108] ss:$16 sps:$4 sm:$0xff]  }
  0xc3   :  { %2150 = vmatprep.mubr.bf16.mxu0 %v4220_v42  ;;  %2263 = vmatprep.mubr.bf16.mxu1 %v4051_v2 }
  0xc5   :  { %2313 = vmatpush2.bf16.msra.mxu0 %v3651_v41  ;;  %2426 = vmatpush2.bf16.msra.mxu1 %v3654_v43  ;;  %v3702_v41 = vld [vmem:[#allocation5 + $0x308] ss:$16 sps:$4 sm:$0xff]   ;;  %v3707_v43 = vld [vmem:[#allocation5 + $0x4ec] ss:$16 sps:$4 sm:$0xff]  }
  0xc6   :  { %2314 = vmatprep.subr.bf16.mxu0 %v3663_v44  ;;  %2427 = vmatprep.subr.bf16.mxu1 %v3666_v47  ;;  %v3710_v44 = vld [vmem:[#allocation5 + $0x6ec] ss:$16 sps:$4 sm:$0xff]   ;;  %v3705_v47 = vld [vmem:[#allocation5 + $0x4e8] ss:$16 sps:$4 sm:$0xff]  }
  0xc8   :  { %2151 = vmatmul.mubr.bf16.gmra.mxu0 %v4232_v49  ;;  %2264 = vmatmul.mubr.bf16.gmra.mxu1 %v4234_v50 }
  0xc9   :  { %2315 = vmatpush2.bf16.msra.mxu0 %v3661_v51  ;;  %2428 = vmatpush2.bf16.msra.mxu1 %v3664_v53  ;;  %v3708_v51 = vld [vmem:[#allocation5 + $0x6e8] ss:$16 sps:$4 sm:$0xff]   ;;  %v3713_v53 = vld [vmem:[#allocation5 + $0x4cc] ss:$16 sps:$4 sm:$0xff]  }
  0xca   :  { %2316 = vmatprep.subr.bf16.mxu0 %v3669_v57  ;;  %2429 = vmatprep.subr.bf16.mxu1 %v3672_v58  ;;  %v3719_v57 = vld [vmem:[#allocation5 + $0x6cc] ss:$16 sps:$4 sm:$0xff]  }
  0xcb   :  { %2160 = vmatprep.mubr.bf16.mxu0 %v4236_v59  ;;  %2273 = vmatprep.mubr.bf16.mxu1 %v4051_v2  ;;  %v3939_v58 = vld [vmem:[#allocation2] ss:$28 sps:$4 sm:$0xff]  }
  0xcd   :  { %2317 = vmatpush2.bf16.msra.mxu0 %v3667_v60  ;;  %2430 = vmatpush2.bf16.msra.mxu1 %v3670_v62  ;;  %v3940_v60 = vld [vmem:[#allocation2 + $0x8] ss:$28 sps:$4 sm:$0xff]  }
  0xce   :  { %2318 = vmatprep.subr.bf16.mxu0 %v3679_v0  ;;  %2431 = vmatprep.subr.bf16.mxu1 %v3682_v1  ;;  %v3711_v62 = vld [vmem:[#allocation5 + $0x4c8] ss:$16 sps:$4 sm:$0xff]  }
  0xcf   :  { %v3717_v0 = vld [vmem:[#allocation5 + $0x6c8] ss:$16 sps:$4 sm:$0xff]  }
  0xd0   :  { %2161 = vmatmul.mubr.bf16.gmra.mxu0 %v4242_v6  ;;  %2274 = vmatmul.mubr.bf16.gmra.mxu1 %v4244_v7  ;;  %v3941_v1 = vld [vmem:[#allocation2 + $0x3c] ss:$28 sps:$4 sm:$0xff]  }
  0xd1   :  { %2319 = vmatpush2.bf16.msra.mxu0 %v3677_v8  ;;  %2432 = vmatpush2.bf16.msra.mxu1 %v3680_v14  ;;  %v3716_v8 = vld [vmem:[#allocation5 + $0x4ac] ss:$16 sps:$4 sm:$0xff]  }
  0xd2   :  { %2320 = vmatprep.subr.bf16.mxu0 %v3685_v16  ;;  %2433 = vmatprep.subr.bf16.mxu1 %v3688_v17  ;;  %v3728_v14 = vld [vmem:[#allocation5 + $0x6ac] ss:$16 sps:$4 sm:$0xff]   ;;  %v3942_v16 = vld [vmem:[#allocation2 + $0x44] ss:$28 sps:$4 sm:$0xff]   ;;  %v3714_v17 = vld [vmem:[#allocation5 + $0x4a8] ss:$16 sps:$4 sm:$0xff]  }
  0xd3   :  { %2170 = vmatprep.mubr.bf16.mxu0 %v4246_v18  ;;  %2283 = vmatprep.mubr.bf16.mxu1 %v4051_v2 }
  0xd5   :  { %2321 = vmatpush2.bf16.msra.mxu0 %v3683_v21  ;;  %2434 = vmatpush2.bf16.msra.mxu1 %v3686_v23  ;;  %v3722_v21 = vld [vmem:[#allocation5 + $0x48c] ss:$16 sps:$4 sm:$0xff]   ;;  %v3726_v23 = vld [vmem:[#allocation5 + $0x6a8] ss:$16 sps:$4 sm:$0xff]  }
  0xd6   :  { %2322 = vmatprep.subr.bf16.mxu0 %v3695_v25  ;;  %2435 = vmatprep.subr.bf16.mxu1 %v3698_v27  ;;  %v3943_v25 = vld [vmem:[#allocation2 + $0x38] ss:$28 sps:$4 sm:$0xff]   ;;  %v3944_v27 = vld [vmem:[#allocation2 + $0x40] ss:$28 sps:$4 sm:$0xff]  }
  0xd8   :  { %2171 = vmatmul.mubr.bf16.gmra.mxu0 %v4252_v28  ;;  %2284 = vmatmul.mubr.bf16.gmra.mxu1 %v4254_v30 }
  0xd9   :  { %2323 = vmatpush2.bf16.msra.mxu0 %v3693_v33  ;;  %2436 = vmatpush2.bf16.msra.mxu1 %v3696_v34  ;;  %v3737_v33 = vld [vmem:[#allocation5 + $0x68c] ss:$16 sps:$4 sm:$0xff]   ;;  %v3720_v34 = vld [vmem:[#allocation5 + $0x488] ss:$16 sps:$4 sm:$0xff]  }
  0xda   :  { %2324 = vmatprep.subr.bf16.mxu0 %v3701_v36  ;;  %2437 = vmatprep.subr.bf16.mxu1 %v3704_v37  ;;  %v3945_v36 = vld [vmem:[#allocation2 + $0x74] ss:$28 sps:$4 sm:$0xff]   ;;  %v3946_v37 = vld [vmem:[#allocation2 + $0x7c] ss:$28 sps:$4 sm:$0xff]  }
  0xdb   :  { %2326 = vmatprep.mubr.bf16.mxu0 %v3937_v45  ;;  %2439 = vmatprep.mubr.bf16.mxu1 %v3938_v46  ;;  %v3746_v45 = vld [vmem:[#allocation5 + $0x66c] ss:$16 sps:$4 sm:$0xff]  }
  0xdc   :  { %v3947_v46 = vld [vmem:[#allocation2 + $0x70] ss:$28 sps:$4 sm:$0xff]  }
  0xdd   :  { %2325 = vmatpush2.bf16.msra.mxu0 %v3699_v40  ;;  %2438 = vmatpush2.bf16.msra.mxu1 %v3702_v41  ;;  %v3725_v40 = vld [vmem:[#allocation5 + $0x46c] ss:$16 sps:$4 sm:$0xff]   ;;  %v3735_v41 = vld [vmem:[#allocation5 + $0x688] ss:$16 sps:$4 sm:$0xff]  }
  0xde   :  { %2520 = vmatprep.subr.bf16.mxu0 %v3707_v43  ;;  %2633 = vmatprep.subr.bf16.mxu1 %v3710_v44  ;;  %v3723_v43 = vld [vmem:[#allocation5 + $0x468] ss:$16 sps:$4 sm:$0xff]   ;;  %v3731_v44 = vld [vmem:[#allocation5 + $0x44c] ss:$16 sps:$4 sm:$0xff]  }
  0xe0   :  { %2327 = vmatmul.mubr.bf16.vlgmr.msra.gmra.mxu0 %v3939_v58  ;;  %2440 = vmatmul.mubr.bf16.vlgmr.msra.gmra.mxu1 %v3940_v60  ;;  %v3755_v58 = vld [vmem:[#allocation5 + $0x64c] ss:$16 sps:$4 sm:$0xff]   ;;  %v3950_v60 = vld [vmem:[#allocation2 + $0xb4] ss:$28 sps:$4 sm:$0xff]  }
  0xe1   :  { %2521 = vmatpush1.bf16.msra.mxu0 %v3705_v47  ;;  %2634 = vmatpush1.bf16.msra.mxu1 %v3708_v51  ;;  %v3948_v47 = vld [vmem:[#allocation2 + $0x78] ss:$28 sps:$4 sm:$0xff]  }
  0xe2   :  { %2522 = vmatprep.subr.bf16.mxu0 %v3713_v53  ;;  %2336 = vmatprep.mubr.bf16.mxu0 %v3941_v1  ;;  %v3744_v51 = vld [vmem:[#allocation5 + $0x668] ss:$16 sps:$4 sm:$0xff]   ;;  %v3740_v1 = vld [vmem:[#allocation5 + $0x40c] ss:$16 sps:$4 sm:$0xff]  }
  0xe3   :  { %2449 = vmatprep.mubr.bf16.mxu1 %v3942_v16  ;;  %2635 = vmatprep.subr.bf16.mxu1 %v3719_v57  ;;  %v3729_v53 = vld [vmem:[#allocation5 + $0x448] ss:$16 sps:$4 sm:$0xff]   ;;  %v3952_v16 = vld [vmem:[#allocation2 + $0xb0] ss:$28 sps:$4 sm:$0xff]  }
  0xe4   :  { %v3949_v57 = vld [vmem:[#allocation2 + $0xac] ss:$28 sps:$4 sm:$0xff]  }
  0xe5   :  { %2523 = vmatpush1.bf16.msra.mxu0 %v3711_v62  ;;  %2636 = vmatpush1.bf16.msra.mxu1 %v3717_v0  ;;  %v3734_v62 = vld [vmem:[#allocation5 + $0x42c] ss:$16 sps:$4 sm:$0xff]   ;;  %v3732_v0 = vld [vmem:[#allocation5 + $0x428] ss:$16 sps:$4 sm:$0xff]  }
  0xe6   :  { %2524 = vmatprep.subr.bf16.mxu0 %v3716_v8  ;;  %2637 = vmatprep.subr.bf16.mxu1 %v3728_v14  ;;  %v3753_v8 = vld [vmem:[#allocation5 + $0x648] ss:$16 sps:$4 sm:$0xff]  }
  0xe7   :  { %v3951_v14 = vld [vmem:[#allocation2 + $0xa8] ss:$28 sps:$4 sm:$0xff]  }
  0xe8   :  { %2337 = vmatmul.mubr.bf16.gmra.mxu0 %v3943_v25  ;;  %2450 = vmatmul.mubr.bf16.gmra.mxu1 %v3944_v27  ;;  %v3954_v25 = vld [vmem:[#allocation2 + $0xec] ss:$28 sps:$4 sm:$0xff]  }
  0xe9   :  { %2525 = vmatpush1.bf16.msra.mxu0 %v3714_v17  ;;  %2346 = vmatprep.mubr.bf16.mxu0 %v3945_v36  ;;  %v3764_v17 = vld [vmem:[#allocation5 + $0x62c] ss:$16 sps:$4 sm:$0xff]  }
  0xea   :  { %2526 = vmatprep.subr.bf16.mxu0 %v3722_v21  ;;  %2459 = vmatprep.mubr.bf16.mxu1 %v3946_v37  ;;  %v3738_v21 = vld [vmem:[#allocation5 + $0x408] ss:$16 sps:$4 sm:$0xff]   ;;  %v3743_v27 = vld [vmem:[#allocation5 + $0x5ec] ss:$16 sps:$4 sm:$0xff]  }
  0xeb   :  { %2638 = vmatpush1.bf16.msra.mxu1 %v3726_v23  ;;  %v3953_v23 = vld [vmem:[#allocation2 + $0xe4] ss:$28 sps:$4 sm:$0xff]   ;;  %v3749_v36 = vld [vmem:[#allocation5 + $0x5cc] ss:$16 sps:$4 sm:$0xff]  }
  0xec   :  { %2639 = vmatprep.subr.bf16.mxu1 %v3737_v33  ;;  %v3762_v33 = vld [vmem:[#allocation5 + $0x628] ss:$16 sps:$4 sm:$0xff]   ;;  %v3773_v37 = vld [vmem:[#allocation5 + $0x60c] ss:$16 sps:$4 sm:$0xff]  }
  0xed   :  { %2527 = vmatpush1.bf16.msra.mxu0 %v3720_v34  ;;  %v3741_v34 = vld [vmem:[#allocation5 + $0x5e8] ss:$16 sps:$4 sm:$0xff]  }
  0xee   :  { %2528 = vmatprep.subr.bf16.mxu0 %v3725_v40  ;;  %v3955_v40 = vld [vmem:[#allocation2 + $0xe0] ss:$28 sps:$4 sm:$0xff]  }
  0xef   :  { %2640 = vmatpush1.bf16.msra.mxu1 %v3735_v41  ;;  %v3956_v41 = vld [vmem:[#allocation2 + $0xe8] ss:$28 sps:$4 sm:$0xff]  }
  0xf0   :  { %2347 = vmatmul.mubr.bf16.gmra.mxu0 %v3947_v46  ;;  %2460 = vmatmul.mubr.bf16.gmra.mxu1 %v3948_v47  ;;  %v3750_v46 = vld [vmem:[#allocation5 + $0x5a8] ss:$16 sps:$4 sm:$0xff]   ;;  %v3758_v47 = vld [vmem:[#allocation5 + $0x58c] ss:$16 sps:$4 sm:$0xff]  }
  0xf1   :  { %2529 = vmatpush1.bf16.msra.mxu0 %v3723_v43  ;;  %2356 = vmatprep.mubr.bf16.mxu0 %v3949_v57  ;;  %v3771_v43 = vld [vmem:[#allocation5 + $0x608] ss:$16 sps:$4 sm:$0xff]  }
  0xf2   :  { %2530 = vmatprep.subr.bf16.mxu0 %v3731_v44  ;;  %2469 = vmatprep.mubr.bf16.mxu1 %v3950_v60  ;;  %v3747_v44 = vld [vmem:[#allocation5 + $0x5c8] ss:$16 sps:$4 sm:$0xff]  }
  0xf3   :  { %2641 = vmatprep.subr.bf16.mxu1 %v3746_v45  ;;  %v3752_v45 = vld [vmem:[#allocation5 + $0x5ac] ss:$16 sps:$4 sm:$0xff]  }
  0xf4   :  { %2642 = vmatpush1.bf16.msra.mxu1 %v3744_v51  ;;  %v3756_v51 = vld [vmem:[#allocation5 + $0x588] ss:$16 sps:$4 sm:$0xff]  }
  0xf5   :  { %2531 = vmatpush1.bf16.msra.mxu0 %v3729_v53  ;;  %2643 = vmatprep.subr.bf16.mxu1 %v3755_v58  ;;  %v3767_v53 = vld [vmem:[#allocation5 + $0x54c] ss:$16 sps:$4 sm:$0xff]  }
  0xf6   :  { %2532 = vmatprep.subr.bf16.mxu0 %v3734_v62  ;;  %v4284_v62 = vpop.permute.xlu1 %366 }
  0xf7   :  { %4868 = vst [vmem:[#allocation16_spill] sm:$0xff] %v4284_v62 }
  0xf8   :  { %2357 = vmatmul.mubr.bf16.gmra.mxu0 %v3951_v14  ;;  %2470 = vmatmul.mubr.bf16.gmra.mxu1 %v3952_v16 }
  0xf9   :  { %2533 = vmatpush1.bf16.msra.mxu0 %v3732_v0  ;;  %2366 = vmatprep.mubr.bf16.mxu0 %v3953_v23 }
  0xfa   :  { %2534 = vmatprep.subr.bf16.mxu0 %v3740_v1  ;;  %2479 = vmatprep.mubr.bf16.mxu1 %v3954_v25 }
  0xfb   :  { %2644 = vmatpush1.bf16.msra.mxu1 %v3753_v8 }
  0xfc   :  { %2645 = vmatprep.subr.bf16.mxu1 %v3764_v17 }
  0xfd   :  { %2535 = vmatpush1.bf16.msra.mxu0 %v3738_v21 }
  0xfe   :  { %2536 = vmatprep.subr.bf16.mxu0 %v3743_v27  ;;  %v4297_v27 = vpop.permute.xlu1 %371 }
  0xff   :  { %2646 = vmatpush1.bf16.msra.mxu1 %v3762_v33  ;;  %4869 = vst [vmem:[#allocation17_spill] sm:$0xff] %v4297_v27 }
 0x100   :  { %2367 = vmatmul.mubr.bf16.gmra.mxu0 %v3955_v40  ;;  %2480 = vmatmul.mubr.bf16.gmra.mxu1 %v3956_v41 }
 0x101   :  { %2537 = vmatpush2.bf16.msra.mxu0 %v3741_v34  ;;  %2376 = vmatprep.mubr.bf16.mxu0 %v4094_v55  ;;  %v3761_v55 = vld [vmem:[#allocation5 + $0x56c] ss:$16 sps:$4 sm:$0xff]  }
 0x102   :  { %2538 = vmatprep.subr.bf16.mxu0 %v3749_v36  ;;  %2489 = vmatprep.mubr.bf16.mxu1 %v4096_v56  ;;  %v3759_v56 = vld [vmem:[#allocation5 + $0x568] ss:$16 sps:$4 sm:$0xff]  }
 0x103   :  { %2647 = vmatprep.subr.bf16.mxu1 %v3773_v37 }
 0x104   :  { %2648 = vmatpush1.bf16.msra.mxu1 %v3771_v43 }
 0x105   :  { %2539 = vmatpush2.bf16.msra.mxu0 %v3747_v44 }
 0x106   :  { %2540 = vmatprep.subr.bf16.mxu0 %v3752_v45 }
 0x108   :  { %2377 = vmatmul.mubr.bf16.gmra.mxu0 %v4100_v61  ;;  %2490 = vmatmul.mubr.bf16.gmra.mxu1 %v4102_v63  ;;  %v3765_v61 = vld [vmem:[#allocation5 + $0x548] ss:$16 sps:$4 sm:$0xff]   ;;  %v3770_v63 = vld [vmem:[#allocation5 + $0x52c] ss:$16 sps:$4 sm:$0xff]  }
 0x109   :  { %2541 = vmatpush2.bf16.msra.mxu0 %v3750_v46  ;;  %2386 = vmatprep.mubr.bf16.mxu0 %v4107_v4  ;;  %v3768_v4 = vld [vmem:[#allocation5 + $0x528] ss:$16 sps:$4 sm:$0xff]  }
 0x10a   :  { %2542 = vmatprep.subr.bf16.mxu0 %v3758_v47  ;;  %2499 = vmatprep.mubr.bf16.mxu1 %v4109_v5  ;;  %v3776_v5 = vld [vmem:[#allocation5 + $0x50c] ss:$16 sps:$4 sm:$0xff]  }
 0x10d   :  { %2543 = vmatpush2.bf16.msra.mxu0 %v3756_v51 }
 0x10e   :  { %2544 = vmatprep.subr.bf16.mxu0 %v3761_v55 }
 0x110   :  { %2387 = vmatmul.mubr.bf16.gmra.mxu0 %v4118_v9  ;;  %2500 = vmatmul.mubr.bf16.gmra.mxu1 %v4120_v10  ;;  %v3774_v9 = vld [vmem:[#allocation5 + $0x508] ss:$16 sps:$4 sm:$0xff]   ;;  %v4272_v10 = vpop.permute.xlu0 %356 }
 0x111   :  { %2545 = vmatpush2.bf16.msra.mxu0 %v3759_v56  ;;  %2396 = vmatprep.mubr.bf16.mxu0 %v4122_v12  ;;  %4866 = vst [vmem:[#allocation14_spill] sm:$0xff] %v4272_v10  ;;  %v4316_v56 = vpop.permute.xlu1 %381 }
 0x112   :  { %2546 = vmatprep.subr.bf16.mxu0 %v3767_v53  ;;  %2509 = vmatprep.mubr.bf16.mxu1 %v4127_v15  ;;  %4871 = vst [vmem:[#allocation19_spill] sm:$0xff] %v4316_v56 }
 0x114   :  { %v4277_v57 = vpop.permute.xlu0 %361 }
 0x115   :  { %2547 = vmatpush2.bf16.msra.mxu0 %v3765_v61  ;;  %4867 = vst [vmem:[#allocation15_spill] sm:$0xff] %v4277_v57 }
 0x116   :  { %2548 = vmatprep.subr.bf16.mxu0 %v3770_v63 }
 0x118   :  { %2397 = vmatmul.mubr.bf16.gmra.mxu0 %v4136_v19  ;;  %2510 = vmatmul.mubr.bf16.gmra.mxu1 %v4138_v20  ;;  %v4307_v43 = vpop.permute.xlu0 %376 }
 0x119   :  { %2549 = vmatpush2.bf16.msra.mxu0 %v3768_v4  ;;  %2552 = vmatprep.mubr.bf16.mxu0 %v4140_v22  ;;  %4870 = vst [vmem:[#allocation18_spill] sm:$0xff] %v4307_v43 }
 0x11a   :  { %2550 = vmatprep.subr.bf16.mxu0 %v3776_v5  ;;  %2665 = vmatprep.mubr.bf16.mxu1 %v4051_v2 }
 0x11d   :  { %2551 = vmatpush2.bf16.msra.mxu0 %v3774_v9 }
 0x120   :  { %v1876_v12 = vpop.f32.mrf.mxu0  ;;  %v1989_v15 = vpop.f32.mrf.mxu1  ;;  %2553 = vmatmul.mubr.bf16.vlgmr.msra.gmra.mxu0 %v4148_v26  ;;  %2666 = vmatmul.mubr.bf16.vlgmr.msra.gmra.mxu1 %v4154_v29 }
 0x121   :  { %v1877_v19 = vadd.f32 %v1876_v12, %v4272_v10  ;;  %2562 = vmatprep.mubr.bf16.mxu0 %v4159_v35  ;;  %2675 = vmatprep.mubr.bf16.mxu1 %v4051_v2 }
 0x122   :  { %v1878_v20 = vpop.f32.mrf.mxu0  ;;  %v1991_v22 = vpop.f32.mrf.mxu1 }
 0x123   :  { %v4281_v58 = vadd.f32 %v1989_v15, %v1877_v19  ;;  %v1879_v60 = vadd.f32 %v1878_v20, %v4272_v10  ;;  %v4327_v15 = vpop.permute.xlu0 %386 }
 0x124   :  { %v1880_v0 = vpop.f32.mrf.mxu0  ;;  %v1993_v26 = vpop.f32.mrf.mxu1  ;;  %4872 = vst [vmem:[#allocation20_spill] sm:$0xff] %v4327_v15 }
 0x125   :  { %v4286_v1 = vadd.f32 %v1991_v22, %v1879_v60  ;;  %v1881_v29 = vadd.f32 %v1880_v0, %v4277_v57 }
 0x126   :  { %v1882_v8 = vpop.f32.mrf.mxu0  ;;  %v1995_v14 = vpop.f32.mrf.mxu1 }
 0x127   :  { %v4289_v16 = vadd.f32 %v1993_v26, %v1881_v29  ;;  %v1883_v35 = vadd.f32 %v1882_v8, %v4277_v57  ;;  %v4336_v29 = vpop.permute.xlu1 %391 }
 0x128   :  { %v1886_v17 = vpop.f32.mrf.mxu0  ;;  %v1999_v21 = vpop.f32.mrf.mxu1  ;;  %2563 = vmatmul.mubr.bf16.gmra.mxu0 %v4163_v38  ;;  %2676 = vmatmul.mubr.bf16.gmra.mxu1 %v4165_v39  ;;  %4873 = vst [vmem:[#allocation21_spill] sm:$0xff] %v4336_v29 }
 0x129   :  { %v4294_v23 = vadd.f32 %v1995_v14, %v1883_v35  ;;  %v1887_v25 = vadd.f32 %v1886_v17, %v4284_v62  ;;  %2572 = vmatprep.mubr.bf16.mxu0 %v4175_v48  ;;  %2685 = vmatprep.mubr.bf16.mxu1 %v4051_v2 }
 0x12a   :  { %v1888_v33 = vpop.f32.mrf.mxu0  ;;  %v2001_v34 = vpop.f32.mrf.mxu1 }
 0x12b   :  { %v4301_v36 = vadd.f32 %v1999_v21, %v1887_v25  ;;  %v1889_v37 = vadd.f32 %v1888_v33, %v4284_v62 }
 0x12c   :  { %v1890_v40 = vpop.f32.mrf.mxu0  ;;  %v2003_v38 = vpop.f32.mrf.mxu1 }
 0x12d   :  { %v4304_v41 = vadd.f32 %v2001_v34, %v1889_v37  ;;  %v1891_v39 = vadd.f32 %v1890_v40, %v4297_v27 }
 0x12e   :  { %v1892_v44 = vpop.f32.mrf.mxu0  ;;  %v2005_v45 = vpop.f32.mrf.mxu1 }
 0x12f   :  { %v4309_v46 = vadd.f32 %v2003_v38, %v1891_v39  ;;  %v1893_v48 = vadd.f32 %v1892_v44, %v4297_v27 }
 0x130   :  { %v1896_v47 = vpop.f32.mrf.mxu0  ;;  %v2009_v51 = vpop.f32.mrf.mxu1  ;;  %2573 = vmatmul.mubr.bf16.gmra.mxu0 %v4179_v52  ;;  %2686 = vmatmul.mubr.bf16.gmra.mxu1 %v4183_v54 }
 0x131   :  { %v4314_v55 = vadd.f32 %v2005_v45, %v1893_v48  ;;  %2582 = vmatprep.mubr.bf16.mxu0 %v4191_v3  ;;  %2695 = vmatprep.mubr.bf16.mxu1 %v4051_v2  ;;  %v1897_v53 = vadd.f32 %v1896_v47, %v4307_v43 }
 0x132   :  { %v1898_v61 = vpop.f32.mrf.mxu0  ;;  %v2011_v63 = vpop.f32.mrf.mxu1 }
 0x133   :  { %v1899_v4 = vadd.f32 %v1898_v61, %v4307_v43  ;;  %v4322_v5 = vadd.f32 %v2009_v51, %v1897_v53 }
 0x134   :  { %v1900_v9 = vpop.f32.mrf.mxu0  ;;  %v2013_v52 = vpop.f32.mrf.mxu1 }
 0x135   :  { %v4324_v12 = vadd.f32 %v2011_v63, %v1899_v4  ;;  %v1901_v54 = vadd.f32 %v1900_v9, %v4316_v56 }
 0x136   :  { %v1902_v19 = vpop.f32.mrf.mxu0  ;;  %v2015_v3 = vpop.f32.mrf.mxu1 }
 0x137   :  { %v4329_v20 = vadd.f32 %v2013_v52, %v1901_v54  ;;  %v1903_v22 = vadd.f32 %v1902_v19, %v4316_v56 }
 0x138   :  { %v1906_v60 = vpop.f32.mrf.mxu0  ;;  %v2019_v0 = vpop.f32.mrf.mxu1  ;;  %2583 = vmatmul.mubr.bf16.gmra.mxu0 %v4197_v11  ;;  %2696 = vmatmul.mubr.bf16.gmra.mxu1 %v4199_v13 }
 0x139   :  { %v4334_v26 = vadd.f32 %v2015_v3, %v1903_v22  ;;  %2592 = vmatprep.mubr.bf16.mxu0 %v4207_v24  ;;  %2705 = vmatprep.mubr.bf16.mxu1 %v4051_v2  ;;  %v1907_v8 = vadd.f32 %v1906_v60, %v4327_v15 }
 0x13a   :  { %v1908_v14 = vpop.f32.mrf.mxu0  ;;  %v2021_v35 = vpop.f32.mrf.mxu1 }
 0x13b   :  { %v1909_v17 = vadd.f32 %v1908_v14, %v4327_v15  ;;  %v4342_v21 = vadd.f32 %v2019_v0, %v1907_v8 }
 0x13c   :  { %v1910_v25 = vpop.f32.mrf.mxu0  ;;  %v2023_v11 = vpop.f32.mrf.mxu1 }
 0x13d   :  { %v4344_v33 = vadd.f32 %v2021_v35, %v1909_v17  ;;  %v1911_v13 = vadd.f32 %v1910_v25, %v4336_v29 }
 0x13e   :  { %v1912_v34 = vpop.f32.mrf.mxu0  ;;  %v2025_v37 = vpop.f32.mrf.mxu1 }
 0x13f   :  { %v4347_v40 = vadd.f32 %v2023_v11, %v1911_v13  ;;  %v1913_v24 = vadd.f32 %v1912_v34, %v4336_v29 }
 0x140   :  { %v4350_v38 = vpop.f32.mrf.mxu0  ;;  %v4352_v39 = vpop.f32.mrf.mxu1  ;;  %2593 = vmatmul.mubr.bf16.gmra.mxu0 %v4213_v31  ;;  %2706 = vmatmul.mubr.bf16.gmra.mxu1 %v4215_v32 }
 0x141   :  { %v4356_v44 = vadd.f32 %v2025_v37, %v1913_v24  ;;  %2602 = vmatprep.mubr.bf16.mxu0 %v4220_v42  ;;  %2715 = vmatprep.mubr.bf16.mxu1 %v4051_v2 }
 0x142   :  { %v4360_v45 = vpop.f32.mrf.mxu0  ;;  %v4362_v48 = vpop.f32.mrf.mxu1 }
 0x144   :  { %v4364_v47 = vpop.f32.mrf.mxu0  ;;  %v4366_v51 = vpop.f32.mrf.mxu1 }
 0x146   :  { %v4368_v53 = vpop.f32.mrf.mxu0  ;;  %v4370_v61 = vpop.f32.mrf.mxu1 }
 0x148   :  { %v4372_v31 = vpop.f32.mrf.mxu0  ;;  %v4374_v32 = vpop.f32.mrf.mxu1  ;;  %2603 = vmatmul.mubr.bf16.gmra.mxu0 %v4232_v49  ;;  %2716 = vmatmul.mubr.bf16.gmra.mxu1 %v4234_v50 }
 0x149   :  { %2612 = vmatprep.mubr.bf16.mxu0 %v4236_v59  ;;  %2725 = vmatprep.mubr.bf16.mxu1 %v4051_v2 }
 0x14a   :  { %v4380_v42 = vpop.f32.mrf.mxu0  ;;  %v4382_v63 = vpop.f32.mrf.mxu1 }
 0x14c   :  { %v4384_v4 = vpop.f32.mrf.mxu0  ;;  %v4386_v9 = vpop.f32.mrf.mxu1 }
 0x14e   :  { %v4388_v52 = vpop.f32.mrf.mxu0  ;;  %v4390_v54 = vpop.f32.mrf.mxu1 }
 0x150   :  { %v4392_v19 = vpop.f32.mrf.mxu0  ;;  %v4394_v49 = vpop.f32.mrf.mxu1  ;;  %2613 = vmatmul.mubr.bf16.gmra.mxu0 %v4242_v6  ;;  %2726 = vmatmul.mubr.bf16.gmra.mxu1 %v4244_v7 }
 0x151   :  { %4874 = vst [vmem:[#allocation22_spill] sm:$0xff] %v4394_v49  ;;  %2622 = vmatprep.mubr.bf16.mxu0 %v4246_v18  ;;  %2735 = vmatprep.mubr.bf16.mxu1 %v4051_v2 }
 0x152   :  { %v4400_v50 = vpop.f32.mrf.mxu0  ;;  %v4402_v59 = vpop.f32.mrf.mxu1 }
 0x153   :  { %4875 = vst [vmem:[#allocation23_spill] sm:$0xff] %v4402_v59  ;;  %v4440_v59 = vpop.permute.xlu0 %396 }
 0x154   :  { %v4404_v3 = vpop.f32.mrf.mxu0  ;;  %v4406_v22 = vpop.f32.mrf.mxu1 }
 0x155   :  { %4876 = vst [vmem:[#allocation24_spill] sm:$0xff] %v4404_v3  ;;  %4877 = vst [vmem:[#allocation25_spill] sm:$0xff] %v4406_v22 }
 0x156   :  { %v4408_v60 = vpop.f32.mrf.mxu0  ;;  %v4410_v0 = vpop.f32.mrf.mxu1 }
 0x157   :  { %4878 = vst [vmem:[#allocation26_spill] sm:$0xff] %v4408_v60  ;;  %4879 = vst [vmem:[#allocation27_spill] sm:$0xff] %v4410_v0  ;;  %v4448_v3 = vpop.permute.xlu0 %406 }
 0x158   :  { %v4412_v8 = vpop.f32.mrf.mxu0  ;;  %v4414_v6 = vpop.f32.mrf.mxu1  ;;  %2623 = vmatmul.mubr.bf16.gmra.mxu0 %v4252_v28  ;;  %2736 = vmatmul.mubr.bf16.gmra.mxu1 %v4254_v30 }
 0x159   :  { %4880 = vst [vmem:[#allocation28_spill] sm:$0xff] %v4412_v8  ;;  %4881 = vst [vmem:[#allocation29_spill] sm:$0xff] %v4414_v6 }
 0x15a   :  { %v4418_v2 = vpop.f32.mrf.mxu0  ;;  %v4420_v7 = vpop.f32.mrf.mxu1 }
 0x15b   :  { %4882 = vst [vmem:[#allocation30_spill] sm:$0xff] %v4418_v2  ;;  %4883 = vst [vmem:[#allocation31_spill] sm:$0xff] %v4420_v7 }
 0x15c   :  { %v4422_v18 = vpop.f32.mrf.mxu0  ;;  %v4424_v14 = vpop.f32.mrf.mxu1 }
 0x15d   :  { %4884 = vst [vmem:[#allocation32_spill] sm:$0xff] %v4422_v18  ;;  %4885 = vst [vmem:[#allocation33_spill] sm:$0xff] %v4424_v14 }
 0x15e   :  { %v4426_v35 = vpop.f32.mrf.mxu0  ;;  %v4428_v17 = vpop.f32.mrf.mxu1 }
 0x15f   :  { %4886 = vst [vmem:[#allocation34_spill] sm:$0xff] %v4426_v35  ;;  %4887 = vst [vmem:[#allocation35_spill] sm:$0xff] %v4428_v17 }
 0x160   :  { %v2102_v25 = vpop.f32.mrf.mxu0  ;;  %v2215_v11 = vpop.f32.mrf.mxu1 }
 0x161   :  { %v2103_v17 = vadd.f32 %v2102_v25, %v4281_v58  ;;  %v4444_v25 = vpop.permute.xlu1 %401 }
 0x162   :  { %v2104_v13 = vpop.f32.mrf.mxu0  ;;  %v2217_v34 = vpop.f32.mrf.mxu1 }
 0x163   :  { %v2105_v14 = vadd.f32 %v2104_v13, %v4286_v1  ;;  %v2216_v49 = vadd.f32 %v2215_v11, %v2103_v17 }
 0x164   :  { %v2106_v37 = vpop.f32.mrf.mxu0  ;;  %v2219_v28 = vpop.f32.mrf.mxu1 }
 0x165   :  { %v2107_v35 = vadd.f32 %v2106_v37, %v4289_v16  ;;  %v2218_v8 = vadd.f32 %v2217_v34, %v2105_v14  ;;  %3777 = vtanh.f32 %v2216_v49 }
 0x166   :  { %v2108_v24 = vpop.f32.mrf.mxu0  ;;  %v2221_v30 = vpop.f32.mrf.mxu1 }
 0x167   :  { %v2109_v0 = vadd.f32 %v2108_v24, %v4294_v23  ;;  %v2220_v1 = vadd.f32 %v2219_v28, %v2107_v35  ;;  %3779 = vtanh.f32 %v2218_v8 }
 0x168   :  { %v2112_v29 = vpop.f32.mrf.mxu0  ;;  %v2225_v15 = vpop.f32.mrf.mxu1 }
 0x169   :  { %v2113_v13 = vadd.f32 %v2112_v29, %v4301_v36  ;;  %v2222_v16 = vadd.f32 %v2221_v30, %v2109_v0  ;;  %v1917_v36 = vadd.f32 %v4350_v38, %v4440_v59  ;;  %v4457_v29 = vpop.permute.xlu1 %411  ;;  %3781 = vtanh.f32 %v2220_v1 }
 0x16a   :  { %v2114_v56 = vpop.f32.mrf.mxu0  ;;  %v2227_v43 = vpop.f32.mrf.mxu1 }
 0x16b   :  { %v2226_v49 = vadd.f32 %v2225_v15, %v2113_v13  ;;  %3783 = vtanh.f32 %v2222_v16  ;;  %v1929_v15 = vadd.f32 %v4380_v42, %v4448_v3  ;;  %v2030_v17 = vadd.f32 %v4352_v39, %v1917_v36 }
 0x16c   :  { %v2116_v27 = vpop.f32.mrf.mxu0  ;;  %v4430_v62 = vpop.f32.mrf.mxu1 }
 0x16d   :  { %v2117_v38 = vadd.f32 %v2116_v27, %v4309_v46  ;;  %v4480_v34 = vpop.permute.xlu1 %421  ;;  %v4484_v28 = vadd.f32 %v4382_v63, %v1929_v15  ;;  %v4899_v15 = vld [vmem:[#allocation23_spill] sm:$0xff] }
 0x16e   :  { %v4432_v57 = vpop.f32.mrf.mxu0  ;;  %v4434_v10 = vpop.f32.mrf.mxu1  ;;  %4890 = vst [vmem:[#allocation38_spill] sm:$0xff] %v4480_v34 }
 0x16f   :  { %4888 = vst [vmem:[#allocation36_spill] sm:$0xff] %v4434_v10  ;;  %v2119_v63 = vadd.f32 %v4432_v57, %v4314_v55  ;;  %v4894_v57 = vld [vmem:[#allocation26_spill] sm:$0xff] }
 0x170   :  { %v2122_v7 = vpop.f32.mrf.mxu0  ;;  %v2235_v6 = vpop.f32.mrf.mxu1  ;;  %v1943_v55 = vadd.f32 %v4894_v57, %v4480_v34 }
 0x171   :  { %v2123_v2 = vadd.f32 %v2122_v7, %v4322_v5  ;;  %v2115_v5 = vadd.f32 %v2114_v56, %v4304_v41  ;;  %v1923_v56 = vadd.f32 %v4368_v53, %v4444_v25 }
 0x172   :  { %v2124_v22 = vpop.f32.mrf.mxu0  ;;  %v2237_v18 = vpop.f32.mrf.mxu1 }
 0x173   :  { %v2125_v10 = vadd.f32 %v2124_v22, %v4324_v12  ;;  %v2236_v7 = vadd.f32 %v2235_v6, %v2123_v2  ;;  %v1919_v12 = vadd.f32 %v4360_v45, %v4440_v59  ;;  %v2228_v8 = vadd.f32 %v2227_v43, %v2115_v5  ;;  %v4473_v2 = vpop.permute.xlu0 %416  ;;  %v3778_v5 = vpop.eup %3777 }
 0x174   :  { %v2126_v60 = vpop.f32.mrf.mxu0  ;;  %v2239_v58 = vpop.f32.mrf.mxu1  ;;  %v1933_v43 = vadd.f32 %v4388_v52, %v4457_v29  ;;  %4889 = vst [vmem:[#allocation37_spill] sm:$0xff] %v4473_v2  ;;  %v2036_v11 = vadd.f32 %v4370_v61, %v1923_v56  ;;  %v2230_v52 = vadd.f32 %v4430_v62, %v2117_v38 }
 0x175   :  { %v2127_v23 = vadd.f32 %v2126_v60, %v4329_v20  ;;  %v2238_v22 = vadd.f32 %v2237_v18, %v2125_v10  ;;  %v1921_v20 = vadd.f32 %v4364_v47, %v4444_v25  ;;  %3785 = vtanh.f32 %v2236_v7 }
 0x176   :  { %v2128_v37 = vpop.f32.mrf.mxu0  ;;  %v2241_v24 = vpop.f32.mrf.mxu1  ;;  %v1927_v47 = vadd.f32 %v4372_v31, %v4448_v3  ;;  %v2032_v31 = vadd.f32 %v4362_v48, %v1919_v12 }
 0x177   :  { %v2129_v41 = vadd.f32 %v2128_v37, %v4334_v26  ;;  %v2240_v45 = vadd.f32 %v2239_v58, %v2127_v23  ;;  %v1931_v26 = vadd.f32 %v4384_v4, %v4457_v29  ;;  %3787 = vtanh.f32 %v2238_v22  ;;  %v4494_v61 = vpop.permute.xlu0 %426  ;;  %v4504_v37 = vpop.permute.xlu1 %431 }
 0x178   :  { %v2132_v14 = vpop.f32.mrf.mxu0  ;;  %v2245_v35 = vpop.f32.mrf.mxu1  ;;  %3789 = vtanh.f32 %v2226_v49  ;;  %v2040_v1 = vadd.f32 %v4374_v32, %v1927_v47  ;;  %4891 = vst [vmem:[#allocation39_spill] sm:$0xff] %v4494_v61  ;;  %v1937_v32 = vadd.f32 %v4392_v19, %v4473_v2 }
 0x179   :  { %v2133_v10 = vadd.f32 %v2132_v14, %v4342_v21  ;;  %v2242_v27 = vadd.f32 %v2241_v24, %v2129_v41  ;;  %3791 = vtanh.f32 %v2240_v45  ;;  %v4489_v39 = vadd.f32 %v4386_v9, %v1931_v26  ;;  %v3780_v19 = vpop.eup %3779  ;;  %v4896_v41 = vld [vmem:[#allocation30_spill] sm:$0xff]  ;;  %v4897_v45 = vld [vmem:[#allocation36_spill] sm:$0xff] }
 0x17a   :  { %v2134_v60 = vpop.f32.mrf.mxu0  ;;  %v2247_v0 = vpop.f32.mrf.mxu1  ;;  %3793 = vtanh.f32 %v2228_v8  ;;  %v1939_v9 = vadd.f32 %v4400_v50, %v4473_v2  ;;  %v1949_v56 = vadd.f32 %v4896_v41, %v4494_v61  ;;  %v4898_v8 = vld [vmem:[#allocation22_spill] sm:$0xff] }
 0x17b   :  { %v2135_v53 = vadd.f32 %v2134_v60, %v4344_v33  ;;  %v2246_v42 = vadd.f32 %v2245_v35, %v2133_v10  ;;  %v2034_v33 = vadd.f32 %v4366_v51, %v1921_v20  ;;  %v4492_v51 = vadd.f32 %v4390_v54, %v1933_v43  ;;  %v4892_v54 = vld [vmem:[#allocation24_spill] sm:$0xff]  ;;  %v3782_v49 = vpop.eup %3781 }
 0x17c   :  { %v2136_v6 = vpop.f32.mrf.mxu0  ;;  %v2249_v21 = vpop.f32.mrf.mxu1  ;;  %3795 = vtanh.f32 %v2242_v27  ;;  %v1941_v23 = vadd.f32 %v4892_v54, %v4480_v34  ;;  %4893 = vst [vmem:[#allocation24_spill] sm:$0xff] %v4504_v37  ;;  %v4895_v35 = vld [vmem:[#allocation28_spill] sm:$0xff]  ;;  %v2232_v10 = vadd.f32 %v4897_v45, %v2119_v63  ;;  %v4514_v38 = vadd.f32 %v4898_v8, %v1937_v32  ;;  %v4901_v27 = vld [vmem:[#allocation25_spill] sm:$0xff]  ;;  %v4905_v63 = vld [vmem:[#allocation31_spill] sm:$0xff] }
 0x17d   :  { %v2137_v46 = vadd.f32 %v2136_v6, %v4347_v40  ;;  %v2248_v40 = vadd.f32 %v2247_v0, %v2135_v53  ;;  %3797 = vtanh.f32 %v2246_v42  ;;  %v1947_v50 = vadd.f32 %v4895_v35, %v4494_v61  ;;  %v3784_v47 = vpop.eup %3783  ;;  %v4900_v53 = vld [vmem:[#allocation32_spill] sm:$0xff]  ;;  %v4906_v54 = vld [vmem:[#allocation33_spill] sm:$0xff] }
 0x17e   :  { %v2138_v18 = vpop.f32.mrf.mxu0  ;;  %v2251_v4 = vpop.f32.mrf.mxu1  ;;  %3799 = vtanh.f32 %v2230_v52  ;;  %v4517_v26 = vadd.f32 %v4899_v15, %v1939_v9  ;;  %v1951_v6 = vadd.f32 %v4900_v53, %v4504_v37  ;;  %v4903_v52 = vld [vmem:[#allocation34_spill] sm:$0xff] }
 0x17f   :  { %v2139_v48 = vadd.f32 %v2138_v18, %v4356_v44  ;;  %v2250_v62 = vadd.f32 %v2249_v21, %v2137_v46  ;;  %3801 = vtanh.f32 %v2248_v40  ;;  %v4522_v46 = vadd.f32 %v4901_v27, %v1941_v23 }
 0x180   :  { %v2142_v30 = vpop.f32.mrf.mxu0  ;;  %v2255_v58 = vpop.f32.mrf.mxu1  ;;  %v1953_v40 = vadd.f32 %v4903_v52, %v4504_v37  ;;  %v4536_v23 = vadd.f32 %v4906_v54, %v1951_v6 }
 0x181   :  { %v2143_v13 = vadd.f32 %v2142_v30, %v2030_v17  ;;  %v2252_v7 = vadd.f32 %v2251_v4, %v2139_v48  ;;  %3803 = vtanh.f32 %v2250_v62  ;;  %v4904_v30 = vld [vmem:[#allocation29_spill] sm:$0xff] }
 0x182   :  { %v2144_v44 = vpop.f32.mrf.mxu0  ;;  %v2257_v16 = vpop.f32.mrf.mxu1 }
 0x183   :  { %v2145_v24 = vadd.f32 %v2144_v44, %v2032_v31  ;;  %v2256_v12 = vadd.f32 %v2255_v58, %v2143_v13  ;;  %v3786_v43 = vpop.eup %3785  ;;  %v4902_v31 = vld [vmem:[#allocation27_spill] sm:$0xff]  ;;  %v4530_v58 = vadd.f32 %v4904_v30, %v1947_v50  ;;  %v4533_v13 = vadd.f32 %v4905_v63, %v1949_v56 }
 0x184   :  { %v2146_v22 = vpop.f32.mrf.mxu0  ;;  %v2259_v14 = vpop.f32.mrf.mxu1  ;;  %v4525_v42 = vadd.f32 %v4902_v31, %v1943_v55  ;;  %v2810_v44 = vmul.f32 0.5, %v3778_v5  ;;  %v4907_v5 = vld [vmem:[#allocation35_spill] sm:$0xff] }
 0x185   :  { %v2258_v36 = vadd.f32 %v2257_v16, %v2145_v24  ;;  %v2147_v20 = vadd.f32 %v2146_v22, %v2034_v33  ;;  %3805 = vtanh.f32 %v2256_v12  ;;  %v3788_v33 = vpop.eup %3787  ;;  %v2842_v24 = vmul.f32 0.5, %v3786_v43 }
 0x186   :  { %v2148_v60 = vpop.f32.mrf.mxu0  ;;  %v2261_v0 = vpop.f32.mrf.mxu1  ;;  %v2814_v12 = vmul.f32 0.5, %v3782_v49  ;;  %v2843_v22 = vmul.f32 0.5, %v3788_v33  ;;  %v4540_v50 = vadd.f32 %v4907_v5, %v1953_v40  ;;  %v2826_v56 = vadd.f32 0.5, %v2810_v44 }
 0x187   :  { %3807 = vtanh.f32 %v2258_v36  ;;  %v2260_v21 = vadd.f32 %v2259_v14, %v2147_v20  ;;  %v2149_v18 = vadd.f32 %v2148_v60, %v2036_v11  ;;  %v3790_v62 = vpop.eup %3789  ;;  %v2815_v36 = vmul.f32 0.5, %v3784_v47  ;;  %v2906_v47 = vld [vmem:[%s4839_s3] sm:$0xff] }
 0x188   :  { %3809 = vtanh.f32 %v2252_v7  ;;  %v2152_v4 = vpop.f32.mrf.mxu0  ;;  %v2265_v17 = vpop.f32.mrf.mxu1  ;;  %v2811_v7 = vmul.f32 0.5, %v3780_v19  ;;  %v2818_v45 = vmul.f32 0.5, %v3790_v62  ;;  %v2858_v8 = vadd.f32 0.5, %v2842_v24 }
 0x189   :  { %3811 = vtanh.f32 %v2260_v21  ;;  %v2153_v48 = vadd.f32 %v2152_v4, %v2040_v1  ;;  %v2262_v16 = vadd.f32 %v2261_v0, %v2149_v18  ;;  %v3792_v9 = vpop.eup %3791  ;;  %v2830_v21 = vadd.f32 0.5, %v2814_v12 }
 0x18a   :  { %3813 = vtanh.f32 %v2232_v10  ;;  %v2154_v32 = vpop.f32.mrf.mxu0  ;;  %v2267_v11 = vpop.f32.mrf.mxu1  ;;  %v2846_v10 = vmul.f32 0.5, %v3792_v9  ;;  %v2827_v6 = vadd.f32 0.5, %v2811_v7  ;;  %v2859_v43 = vadd.f32 0.5, %v2843_v22  ;;  %v2910_v9 = vld [vmem:[%s4839_s3 + $0x20] sm:$0xff] }
 0x18b   :  { %v2266_v57 = vadd.f32 %v2265_v17, %v2153_v48  ;;  %v2155_v1 = vadd.f32 %v2154_v32, %v4484_v28  ;;  %v3794_v55 = vpop.eup %3793  ;;  %3815 = vtanh.f32 %v2262_v16  ;;  %v2831_v4 = vadd.f32 0.5, %v2815_v36  ;;  %v2907_v17 = vld [vmem:[%s4839_s3 + $0x8] sm:$0xff] }
 0x18c   :  { %v2156_v14 = vpop.f32.mrf.mxu0  ;;  %v2269_v35 = vpop.f32.mrf.mxu1  ;;  %v2819_v49 = vmul.f32 0.5, %v3794_v55  ;;  %v2834_v48 = vadd.f32 0.5, %v2818_v45  ;;  %v2862_v30 = vadd.f32 0.5, %v2846_v10 }
 0x18d   :  { %3817 = vtanh.f32 %v2266_v57  ;;  %v2268_v20 = vadd.f32 %v2267_v11, %v2155_v1  ;;  %v3796_v41 = vpop.eup %3795  ;;  %v2157_v60 = vadd.f32 %v2156_v14, %v4489_v39  ;;  %v2922_v11 = vmul.f32 %v2906_v47, %v2858_v8 }
 0x18e   :  { %v2158_v28 = vpop.f32.mrf.mxu0  ;;  %v2271_v0 = vpop.f32.mrf.mxu1  ;;  %v2847_v33 = vmul.f32 0.5, %v3796_v41  ;;  %v4551_v32 = vadd.f32 0.5, %v2819_v49  ;;  %v2923_v57 = vmul.f32 %v2907_v17, %v2859_v43 }
 0x18f   :  { %v3798_v19 = vpop.eup %3797  ;;  %3819 = vtanh.f32 %v2268_v20  ;;  %v2159_v15 = vadd.f32 %v2158_v28, %v4492_v51  ;;  %v2270_v27 = vadd.f32 %v2269_v35, %v2157_v60  ;;  %v2926_v20 = vmul.f32 %v2910_v9, %v2862_v30 }
 0x190   :  { %v3800_v53 = vpop.eup %3799  ;;  %v2162_v31 = vpop.f32.mrf.mxu0  ;;  %v2850_v62 = vmul.f32 0.5, %v3798_v19  ;;  %v2863_v14 = vadd.f32 0.5, %v2847_v33 }
 0x191   :  { %v2275_v18 = vpop.f32.mrf.mxu1  ;;  %v3802_v39 = vpop.eup %3801  ;;  %v2272_v52 = vadd.f32 %v2271_v0, %v2159_v15  ;;  %v2163_v51 = vadd.f32 %v2162_v31, %v4514_v38  ;;  %3821 = vtanh.f32 %v2270_v27  ;;  %v2822_v15 = vmul.f32 0.5, %v3800_v53 }
 0x192   :  { %v3804_v40 = vpop.eup %3803  ;;  %v2164_v63 = vpop.f32.mrf.mxu0  ;;  %v2851_v38 = vmul.f32 0.5, %v3802_v39  ;;  %v2866_v41 = vadd.f32 0.5, %v2850_v62  ;;  %v2915_v39 = vld [vmem:[%s4839_s3 + $0x48] sm:$0xff] }
 0x193   :  { %v2277_v44 = vpop.f32.mrf.mxu1  ;;  %v3806_v16 = vpop.eup %3805  ;;  %3823 = vtanh.f32 %v2272_v52  ;;  %v2276_v54 = vadd.f32 %v2275_v18, %v2163_v51  ;;  %v2165_v55 = vadd.f32 %v2164_v63, %v4517_v26  ;;  %v2911_v26 = vld [vmem:[%s4839_s3 + $0x28] sm:$0xff] }
 0x194   :  { %v3808_v24 = vpop.eup %3807  ;;  %v2938_v1 = vmul.f32 %v3806_v16, %v2826_v56  ;;  %v2166_v7 = vpop.f32.mrf.mxu0  ;;  %v2854_v56 = vmul.f32 0.5, %v3804_v40  ;;  %v2927_v52 = vmul.f32 %v2911_v26, %v2863_v14  ;;  %v4908_v26 = vld [vmem:[#allocation14_spill] sm:$0xff] }
 0x195   :  { %v2279_v12 = vpop.f32.mrf.mxu1  ;;  %v3810_v22 = vpop.eup %3809  ;;  %v2939_v35 = vmul.f32 %v3808_v24, %v2827_v6  ;;  %3825 = vtanh.f32 %v2276_v54  ;;  %v2167_v5 = vadd.f32 %v2166_v7, %v4522_v46  ;;  %v2278_v10 = vadd.f32 %v2277_v44, %v2165_v55  ;;  %v2914_v46 = vld [vmem:[%s4839_s3 + $0x40] sm:$0xff] }
 0x196   :  { %v3812_v36 = vpop.eup %3811  ;;  %v2954_v45 = vadd.f32 %v2938_v1, %v2922_v11  ;;  %v2168_v60 = vpop.f32.mrf.mxu0  ;;  %v2867_v6 = vadd.f32 0.5, %v2851_v38  ;;  %v2855_v47 = vmul.f32 0.5, %v3810_v22  ;;  %v2930_v62 = vmul.f32 %v2914_v46, %v2866_v41 }
 0x197   :  { %v2281_v28 = vpop.f32.mrf.mxu1  ;;  %v3814_v0 = vpop.eup %3813  ;;  %v2955_v19 = vadd.f32 %v2939_v35, %v2923_v57  ;;  %v2942_v49 = vmul.f32 %v3812_v36, %v2830_v21  ;;  %v2169_v8 = vadd.f32 %v2168_v60, %v4525_v42  ;;  %v2280_v43 = vadd.f32 %v2279_v12, %v2167_v5 }
 0x198   :  { %3002 = vst [vmem:[#allocation8] sm:$0xff] %v2954_v45  ;;  %v2172_v27 = vpop.f32.mrf.mxu0  ;;  %v3816_v18 = vpop.eup %3815  ;;  %3827 = vtanh.f32 %v2954_v45  ;;  %v2823_v33 = vmul.f32 0.5, %v3814_v0  ;;  %v2870_v63 = vadd.f32 0.5, %v2854_v56  ;;  %v2931_v9 = vmul.f32 %v2915_v39, %v2867_v6  ;;  %v4909_v39 = vld [vmem:[#allocation15_spill] sm:$0xff] }
 0x199   :  { %v2285_v31 = vpop.f32.mrf.mxu1  ;;  %3003 = vst [vmem:[#allocation8 + $0x8] sm:$0xff] %v2955_v19  ;;  %v2958_v21 = vadd.f32 %v2942_v49, %v2926_v20  ;;  %v2282_v42 = vadd.f32 %v2281_v28, %v2169_v8  ;;  %v2173_v53 = vadd.f32 %v2172_v27, %v4530_v58  ;;  %v2943_v51 = vmul.f32 %v3816_v18, %v2831_v4  ;;  %v2918_v4 = vld [vmem:[%s4839_s3 + $0x60] sm:$0xff] }
 0x19a   :  { %v3818_v17 = vpop.eup %3817  ;;  %3829 = vtanh.f32 %v2278_v10  ;;  %v2174_v40 = vpop.f32.mrf.mxu0  ;;  %v2871_v38 = vadd.f32 0.5, %v2855_v47  ;;  %v2838_v7 = vadd.f32 0.5, %v2822_v15  ;;  %v2839_v5 = vadd.f32 0.5, %v2823_v33 }
 0x19b   :  { %v2287_v30 = vpop.f32.mrf.mxu1  ;;  %3006 = vst [vmem:[#allocation8 + $0x20] sm:$0xff] %v2958_v21  ;;  %v2946_v44 = vmul.f32 %v3818_v17, %v2834_v48  ;;  %v2175_v16 = vadd.f32 %v2174_v40, %v4533_v13  ;;  %v2959_v54 = vadd.f32 %v2943_v51, %v2927_v52  ;;  %3831 = vtanh.f32 %v2280_v43  ;;  %v2919_v13 = vld [vmem:[%s4839_s3 + $0x68] sm:$0xff] }
 0x19c   :  { %v3820_v11 = vpop.eup %3819  ;;  %v2286_v24 = vadd.f32 %v2285_v31, %v2173_v53  ;;  %v2176_v57 = vpop.f32.mrf.mxu0  ;;  %3833 = vtanh.f32 %v2282_v42  ;;  %v2934_v41 = vmul.f32 %v2918_v4, %v2870_v63  ;;  %v2935_v0 = vmul.f32 %v2919_v13, %v2871_v38 }
 0x19d   :  { %v2289_v58 = vpop.f32.mrf.mxu1  ;;  %v2962_v1 = vadd.f32 %v2946_v44, %v2930_v62  ;;  %v2947_v55 = vmul.f32 %v3820_v11, %v4551_v32  ;;  %3835 = vtanh.f32 %v2955_v19  ;;  %3007 = vst [vmem:[#allocation8 + $0x28] sm:$0xff] %v2959_v54  ;;  %v2288_v48 = vadd.f32 %v2287_v30, %v2175_v16 }
 0x19e   :  { %v2177_v12 = vadd.f32 %v2176_v57, %v4536_v23  ;;  %v2178_v22 = vpop.f32.mrf.mxu0  ;;  %v3822_v35 = vpop.eup %3821  ;;  %3837 = vtanh.f32 %v2958_v21 }
 0x19f   :  { %v2291_v14 = vpop.f32.mrf.mxu1  ;;  %3010 = vst [vmem:[#allocation8 + $0x40] sm:$0xff] %v2962_v1  ;;  %v2963_v36 = vadd.f32 %v2947_v55, %v2931_v9  ;;  %v2179_v32 = vadd.f32 %v2178_v22, %v4540_v50  ;;  %v2950_v45 = vmul.f32 %v3822_v35, %v2838_v7  ;;  %3839 = vtanh.f32 %v2286_v24  ;;  %v4910_v9 = vld [vmem:[#allocation16_spill] sm:$0xff] }
 0x1a0   :  { %v3824_v20 = vpop.eup %3823  ;;  %v2290_v10 = vadd.f32 %v2289_v58, %v2177_v12  ;;  %v2328_v60 = vpop.f32.mrf.mxu0  ;;  %3841 = vtanh.f32 %v2959_v54 }
 0x1a1   :  { %v2441_v28 = vpop.f32.mrf.mxu1  ;;  %3011 = vst [vmem:[#allocation8 + $0x48] sm:$0xff] %v2963_v36  ;;  %v2951_v23 = vmul.f32 %v3824_v20, %v2839_v5  ;;  %v2329_v56 = vadd.f32 %v2328_v60, %v4908_v26  ;;  %v2966_v49 = vadd.f32 %v2950_v45, %v2934_v41  ;;  %3843 = vtanh.f32 %v2288_v48  ;;  %v4911_v20 = vld [vmem:[#allocation17_spill] sm:$0xff] }
 0x1a2   :  { %v3826_v19 = vpop.eup %3825  ;;  %v2292_v8 = vadd.f32 %v2291_v14, %v2179_v32  ;;  %v2330_v15 = vpop.f32.mrf.mxu0  ;;  %3845 = vtanh.f32 %v2290_v10 }
 0x1a3   :  { %v2443_v46 = vpop.f32.mrf.mxu1  ;;  %v2967_v50 = vadd.f32 %v2951_v23, %v2935_v0  ;;  %v2874_v6 = vmul.f32 0.5, %v3826_v19  ;;  %v4580_v47 = vadd.f32 %v2441_v28, %v2329_v56  ;;  %3847 = vtanh.f32 %v2962_v1  ;;  %3014 = vst [vmem:[#allocation8 + $0x60] sm:$0xff] %v2966_v49 }
 0x1a4   :  { %v2331_v43 = vadd.f32 %v2330_v15, %v4908_v26  ;;  %v2332_v27 = vpop.f32.mrf.mxu0  ;;  %3849 = vtanh.f32 %v2963_v36 }
 0x1a5   :  { %v2445_v31 = vpop.f32.mrf.mxu1  ;;  %3015 = vst [vmem:[#allocation8 + $0x68] sm:$0xff] %v2967_v50  ;;  %v2890_v18 = vadd.f32 0.5, %v2874_v6  ;;  %v2333_v21 = vadd.f32 %v2332_v27, %v4909_v39  ;;  %v3828_v42 = vpop.eup %3827  ;;  %3851 = vtanh.f32 %v2292_v8 }
 0x1a6   :  { %v4584_v53 = vadd.f32 %v2443_v46, %v2331_v43  ;;  %v2334_v17 = vpop.f32.mrf.mxu0  ;;  %3853 = vtanh.f32 %v2966_v49 }
 0x1a7   :  { %v2447_v33 = vpop.f32.mrf.mxu1  ;;  %v3830_v52 = vpop.eup %3829  ;;  %v2986_v51 = vmul.f32 %v3828_v42, %v2890_v18  ;;  %v4586_v40 = vadd.f32 %v2445_v31, %v2333_v21  ;;  %v2335_v30 = vadd.f32 %v2334_v17, %v4909_v39  ;;  %3855 = vtanh.f32 %v2967_v50  ;;  %v4913_v31 = vld [vmem:[#allocation18_spill] sm:$0xff] }
 0x1a8   :  { %v2875_v62 = vmul.f32 0.5, %v3830_v52  ;;  %v2338_v63 = vpop.f32.mrf.mxu0  ;;  %v3832_v16 = vpop.eup %3831 }
 0x1a9   :  { %v2451_v44 = vpop.f32.mrf.mxu1  ;;  %3018 = vst [vmem:[#allocation7] sm:$0xff] %v2986_v51  ;;  %v4589_v11 = vadd.f32 %v2447_v33, %v2335_v30  ;;  %v2339_v54 = vadd.f32 %v2338_v63, %v4910_v9  ;;  %v3834_v24 = vpop.eup %3833  ;;  %v2878_v58 = vmul.f32 0.5, %v3832_v16 }
 0x1aa   :  { %v2891_v57 = vadd.f32 0.5, %v2875_v62  ;;  %v2340_v4 = vpop.f32.mrf.mxu0  ;;  %v3836_v1 = vpop.eup %3835  ;;  %v2879_v55 = vmul.f32 0.5, %v3834_v24 }
 0x1ab   :  { %v2453_v38 = vpop.f32.mrf.mxu1  ;;  %v4592_v7 = vadd.f32 %v2451_v44, %v2339_v54  ;;  %v2341_v13 = vadd.f32 %v2340_v4, %v4910_v9  ;;  %v3838_v48 = vpop.eup %3837  ;;  %v2894_v22 = vadd.f32 0.5, %v2878_v58  ;;  %v4914_v58 = vld [vmem:[#allocation19_spill] sm:$0xff] }
 0x1ac   :  { %v2987_v12 = vmul.f32 %v3836_v1, %v2891_v57  ;;  %v2342_v14 = vpop.f32.mrf.mxu0  ;;  %v3840_v5 = vpop.eup %3839  ;;  %v2895_v36 = vadd.f32 0.5, %v2879_v55 }
 0x1ad   :  { %v2455_v35 = vpop.f32.mrf.mxu1  ;;  %v4595_v32 = vadd.f32 %v2453_v38, %v2341_v13  ;;  %v2343_v41 = vadd.f32 %v2342_v14, %v4911_v20  ;;  %v3842_v45 = vpop.eup %3841  ;;  %v2990_v10 = vmul.f32 %v3838_v48, %v2894_v22  ;;  %v2882_v60 = vmul.f32 0.5, %v3840_v5 }
 0x1ae   :  { %3019 = vst [vmem:[#allocation7 + $0x8] sm:$0xff] %v2987_v12  ;;  %v2344_v28 = vpop.f32.mrf.mxu0  ;;  %v3844_v23 = vpop.eup %3843  ;;  %v2991_v26 = vmul.f32 %v3842_v45, %v2895_v36  ;;  %v4915_v36 = vld [vmem:[#allocation20_spill] sm:$0xff] }
 0x1af   :  { %v2457_v0 = vpop.f32.mrf.mxu1  ;;  %v4598_v56 = vadd.f32 %v2455_v35, %v2343_v41  ;;  %v2345_v19 = vadd.f32 %v2344_v28, %v4911_v20  ;;  %v3846_v49 = vpop.eup %3845  ;;  %3022 = vst [vmem:[#allocation7 + $0x20] sm:$0xff] %v2990_v10  ;;  %v2898_v8 = vadd.f32 0.5, %v2882_v60  ;;  %v2883_v15 = vmul.f32 0.5, %v3844_v23 }
 0x1b0   :  { %v2348_v46 = vpop.f32.mrf.mxu0  ;;  %v3848_v6 = vpop.eup %3847  ;;  %3023 = vst [vmem:[#allocation7 + $0x28] sm:$0xff] %v2991_v26  ;;  %v2886_v43 = vmul.f32 0.5, %v3846_v49  ;;  %v4916_v26 = vld [vmem:[#allocation21_spill] sm:$0xff] }
 0x1b1   :  { %v2461_v50 = vpop.f32.mrf.mxu1  ;;  %v4601_v27 = vadd.f32 %v2457_v0, %v2345_v19  ;;  %v2349_v18 = vadd.f32 %v2348_v46, %v4913_v31  ;;  %v3850_v39 = vpop.eup %3849  ;;  %v2994_v21 = vmul.f32 %v3848_v6, %v2898_v8  ;;  %v2899_v42 = vadd.f32 0.5, %v2883_v15 }
 0x1b2   :  { %v2350_v17 = vpop.f32.mrf.mxu0  ;;  %v3852_v52 = vpop.eup %3851  ;;  %v2902_v51 = vadd.f32 0.5, %v2886_v43 }
 0x1b3   :  { %4912 = vst [vmem:[#allocation26_spill] sm:$0xff] %v4601_v27  ;;  %v2463_v33 = vpop.f32.mrf.mxu1  ;;  %v4604_v30 = vadd.f32 %v2461_v50, %v2349_v18  ;;  %v2351_v62 = vadd.f32 %v2350_v17, %v4913_v31  ;;  %v3854_v63 = vpop.eup %3853  ;;  %3026 = vst [vmem:[#allocation7 + $0x40] sm:$0xff] %v2994_v21  ;;  %v2995_v44 = vmul.f32 %v3850_v39, %v2899_v42  ;;  %v2887_v16 = vmul.f32 0.5, %v3852_v52 }
 0x1b4   :  { %v2352_v9 = vpop.f32.mrf.mxu0  ;;  %v2998_v24 = vmul.f32 %v3854_v63, %v2902_v51  ;;  %v3856_v13 = vpop.eup %3855 }
 0x1b5   :  { %v2465_v54 = vpop.f32.mrf.mxu1  ;;  %v4607_v57 = vadd.f32 %v2463_v33, %v2351_v62  ;;  %v2353_v4 = vadd.f32 %v2352_v9, %v4914_v58  ;;  %3027 = vst [vmem:[#allocation7 + $0x48] sm:$0xff] %v2995_v44  ;;  %v2903_v38 = vadd.f32 0.5, %v2887_v16 }
 0x1b6   :  { %v2354_v1 = vpop.f32.mrf.mxu0  ;;  %3030 = vst [vmem:[#allocation7 + $0x60] sm:$0xff] %v2998_v24 }
 0x1b7   :  { %v2467_v55 = vpop.f32.mrf.mxu1  ;;  %v4610_v48 = vadd.f32 %v2465_v54, %v2353_v4  ;;  %v2355_v12 = vadd.f32 %v2354_v1, %v4914_v58  ;;  %v2999_v22 = vmul.f32 %v3856_v13, %v2903_v38 }
 0x1b8   :  { %v2358_v14 = vpop.f32.mrf.mxu0 }
 0x1b9   :  { %v2471_v35 = vpop.f32.mrf.mxu1  ;;  %v4613_v5 = vadd.f32 %v2467_v55, %v2355_v12  ;;  %v2359_v20 = vadd.f32 %v2358_v14, %v4915_v36  ;;  %3031 = vst [vmem:[#allocation7 + $0x68] sm:$0xff] %v2999_v22 }
 0x1ba   :  { %v2360_v41 = vpop.f32.mrf.mxu0 }
 0x1bb   :  { %v2473_v45 = vpop.f32.mrf.mxu1  ;;  %v4616_v10 = vadd.f32 %v2471_v35, %v2359_v20  ;;  %v2361_v60 = vadd.f32 %v2360_v41, %v4915_v36 }
 0x1bc   :  { %v2362_v28 = vpop.f32.mrf.mxu0 }
 0x1bd   :  { %v2475_v0 = vpop.f32.mrf.mxu1  ;;  %v4619_v23 = vadd.f32 %v2473_v45, %v2361_v60  ;;  %v2363_v19 = vadd.f32 %v2362_v28, %v4916_v26 }
 0x1be   :  { %v2364_v49 = vpop.f32.mrf.mxu0 }
 0x1bf   :  { %v2477_v8 = vpop.f32.mrf.mxu1  ;;  %v4622_v15 = vadd.f32 %v2475_v0, %v2363_v19  ;;  %v2365_v46 = vadd.f32 %v2364_v49, %v4916_v26 }
 0x1c0   :  { %v4625_v50 = vpop.f32.mrf.mxu0 }
 0x1c1   :  { %v4627_v6 = vpop.f32.mrf.mxu1  ;;  %v4629_v43 = vadd.f32 %v2477_v8, %v2365_v46 }
 0x1c2   :  { %v4631_v31 = vpop.f32.mrf.mxu0 }
 0x1c3   :  { %v4633_v18 = vpop.f32.mrf.mxu1 }
 0x1c4   :  { %v4635_v39 = vpop.f32.mrf.mxu0 }
 0x1c5   :  { %v4637_v21 = vpop.f32.mrf.mxu1 }
 0x1c6   :  { %v4639_v42 = vpop.f32.mrf.mxu0 }
 0x1c7   :  { %v4641_v17 = vpop.f32.mrf.mxu1 }
 0x1c8   :  { %v4643_v33 = vpop.f32.mrf.mxu0 }
 0x1c9   :  { %v4645_v52 = vpop.f32.mrf.mxu1 }
 0x1ca   :  { %v4647_v51 = vpop.f32.mrf.mxu0 }
 0x1cb   :  { %v4649_v62 = vpop.f32.mrf.mxu1 }
 0x1cc   :  { %v4651_v63 = vpop.f32.mrf.mxu0 }
 0x1cd   :  { %v4653_v44 = vpop.f32.mrf.mxu1 }
 0x1ce   :  { %v4655_v16 = vpop.f32.mrf.mxu0 }
 0x1cf   :  { %v4657_v9 = vpop.f32.mrf.mxu1 }
 0x1d0   :  { %v4659_v54 = vpop.f32.mrf.mxu0 }
 0x1d1   :  { %4917 = vst [vmem:[#allocation28_spill] sm:$0xff] %v4659_v54  ;;  %v4661_v24 = vpop.f32.mrf.mxu1 }
 0x1d2   :  { %4918 = vst [vmem:[#allocation30_spill] sm:$0xff] %v4661_v24  ;;  %v4663_v58 = vpop.f32.mrf.mxu0 }
 0x1d3   :  { %4919 = vst [vmem:[#allocation36_spill] sm:$0xff] %v4663_v58  ;;  %v4665_v4 = vpop.f32.mrf.mxu1 }
 0x1d4   :  { %4920 = vst [vmem:[#allocation22_spill] sm:$0xff] %v4665_v4  ;;  %v4667_v38 = vpop.f32.mrf.mxu0 }
 0x1d5   :  { %4921 = vst [vmem:[#allocation23_spill] sm:$0xff] %v4667_v38  ;;  %v4669_v1 = vpop.f32.mrf.mxu1 }
 0x1d6   :  { %4922 = vst [vmem:[#allocation32_spill] sm:$0xff] %v4669_v1  ;;  %v4671_v55 = vpop.f32.mrf.mxu0 }
 0x1d7   :  { %4923 = vst [vmem:[#allocation25_spill] sm:$0xff] %v4671_v55  ;;  %v4673_v13 = vpop.f32.mrf.mxu1 }
 0x1d8   :  { %4924 = vst [vmem:[#allocation27_spill] sm:$0xff] %v4673_v13  ;;  %v4675_v12 = vpop.f32.mrf.mxu0 }
 0x1d9   :  { %4925 = vst [vmem:[#allocation34_spill] sm:$0xff] %v4675_v12  ;;  %v4677_v22 = vpop.f32.mrf.mxu1 }
 0x1da   :  { %4926 = vst [vmem:[#allocation29_spill] sm:$0xff] %v4677_v22  ;;  %v4679_v14 = vpop.f32.mrf.mxu0 }
 0x1db   :  { %4927 = vst [vmem:[#allocation31_spill] sm:$0xff] %v4679_v14  ;;  %v4681_v35 = vpop.f32.mrf.mxu1 }
 0x1dc   :  { %4928 = vst [vmem:[#allocation33_spill] sm:$0xff] %v4681_v35  ;;  %v4683_v36 = vpop.f32.mrf.mxu0 }
 0x1dd   :  { %4929 = vst [vmem:[#allocation35_spill] sm:$0xff] %v4683_v36  ;;  %v4685_v20 = vpop.f32.mrf.mxu1 }
 0x1de   :  { %4930 = vst [vmem:[#allocation14_spill] sm:$0xff] %v4685_v20  ;;  %v4687_v41 = vpop.f32.mrf.mxu0 }
 0x1df   :  { %4931 = vst [vmem:[#allocation15_spill] sm:$0xff] %v4687_v41  ;;  %v4689_v45 = vpop.f32.mrf.mxu1 }
 0x1e0   :  { %4932 = vst [vmem:[#allocation16_spill] sm:$0xff] %v4689_v45  ;;  %v2554_v60 = vpop.f32.mrf.mxu0 }
 0x1e1   :  { %v2667_v28 = vpop.f32.mrf.mxu1  ;;  %v2555_v45 = vadd.f32 %v2554_v60, %v4580_v47 }
 0x1e2   :  { %v2556_v0 = vpop.f32.mrf.mxu0 }
 0x1e3   :  { %v2669_v26 = vpop.f32.mrf.mxu1  ;;  %v2557_v4 = vadd.f32 %v2556_v0, %v4584_v53  ;;  %v2668_v34 = vadd.f32 %v2667_v28, %v2555_v45  ;;  %v4939_v28 = vld [vmem:[#allocation36_spill] sm:$0xff] }
 0x1e4   :  { %v2558_v19 = vpop.f32.mrf.mxu0 }
 0x1e5   :  { %v2671_v49 = vpop.f32.mrf.mxu1  ;;  %v2559_v12 = vadd.f32 %v2558_v19, %v4586_v40  ;;  %v2670_v27 = vadd.f32 %v2669_v26, %v2557_v4  ;;  %3857 = vtanh.f32 %v2668_v34 }
 0x1e6   :  { %v2560_v8 = vpop.f32.mrf.mxu0 }
 0x1e7   :  { %v2673_v46 = vpop.f32.mrf.mxu1  ;;  %v2561_v61 = vadd.f32 %v2560_v8, %v4589_v11  ;;  %v2672_v2 = vadd.f32 %v2671_v49, %v2559_v12  ;;  %3859 = vtanh.f32 %v2670_v27  ;;  %v2379_v27 = vadd.f32 %v4643_v33, %v4448_v3  ;;  %v4941_v49 = vld [vmem:[#allocation23_spill] sm:$0xff] }
 0x1e8   :  { %v2564_v22 = vpop.f32.mrf.mxu0 }
 0x1e9   :  { %v2677_v13 = vpop.f32.mrf.mxu1  ;;  %v2565_v47 = vadd.f32 %v2564_v22, %v4592_v7  ;;  %v2674_v53 = vadd.f32 %v2673_v46, %v2561_v61  ;;  %v2373_v61 = vadd.f32 %v4635_v39, %v4444_v25  ;;  %3861 = vtanh.f32 %v2672_v2 }
 0x1ea   :  { %v2566_v1 = vpop.f32.mrf.mxu0  ;;  %v2381_v2 = vadd.f32 %v4647_v51, %v4448_v3 }
 0x1eb   :  { %v2679_v35 = vpop.f32.mrf.mxu1  ;;  %v2567_v11 = vadd.f32 %v2566_v1, %v4595_v32  ;;  %v2678_v7 = vadd.f32 %v2677_v13, %v2565_v47  ;;  %v2375_v32 = vadd.f32 %v4639_v42, %v4444_v25  ;;  %3863 = vtanh.f32 %v2674_v53  ;;  %v4942_v47 = vld [vmem:[#allocation25_spill] sm:$0xff] }
 0x1ec   :  { %v2568_v37 = vpop.f32.mrf.mxu0  ;;  %v2385_v42 = vadd.f32 %v4655_v16, %v4457_v29  ;;  %v4734_v16 = vadd.f32 %v4649_v62, %v2381_v2 }
 0x1ed   :  { %v4691_v36 = vpop.f32.mrf.mxu1 }
 0x1ee   :  { %v4693_v20 = vpop.f32.mrf.mxu0 }
 0x1ef   :  { %4933 = vst [vmem:[#allocation17_spill] sm:$0xff] %v4693_v20  ;;  %v4695_v41 = vpop.f32.mrf.mxu1 }
 0x1f0   :  { %4934 = vst [vmem:[#allocation18_spill] sm:$0xff] %v4695_v41  ;;  %v2574_v14 = vpop.f32.mrf.mxu0 }
 0x1f1   :  { %v2687_v24 = vpop.f32.mrf.mxu1  ;;  %v2575_v58 = vadd.f32 %v2574_v14, %v4604_v30  ;;  %v2369_v30 = vadd.f32 %v4625_v50, %v4440_v59  ;;  %v4935_v14 = vld [vmem:[#allocation37_spill] sm:$0xff] }
 0x1f2   :  { %v2576_v55 = vpop.f32.mrf.mxu0  ;;  %v2391_v26 = vadd.f32 %v4939_v28, %v4935_v14  ;;  %v3858_v46 = vpop.eup %3857 }
 0x1f3   :  { %v2689_v38 = vpop.f32.mrf.mxu1  ;;  %v2577_v20 = vadd.f32 %v2576_v55, %v4607_v57  ;;  %v2688_v19 = vadd.f32 %v2687_v24, %v2575_v58  ;;  %v2371_v57 = vadd.f32 %v4631_v31, %v4440_v59  ;;  %v2680_v31 = vadd.f32 %v2679_v35, %v2567_v11  ;;  %v4936_v35 = vld [vmem:[#allocation28_spill] sm:$0xff] }
 0x1f4   :  { %v2578_v54 = vpop.f32.mrf.mxu0  ;;  %v2569_v24 = vadd.f32 %v2568_v37, %v4598_v56  ;;  %v2482_v37 = vadd.f32 %v4627_v6, %v2369_v30  ;;  %v4943_v30 = vld [vmem:[#allocation39_spill] sm:$0xff] }
 0x1f5   :  { %v2691_v41 = vpop.f32.mrf.mxu1  ;;  %v2579_v60 = vadd.f32 %v2578_v54, %v4610_v48  ;;  %v2690_v4 = vadd.f32 %v2689_v38, %v2577_v20  ;;  %3865 = vtanh.f32 %v2688_v19  ;;  %v2484_v56 = vadd.f32 %v4633_v18, %v2371_v57  ;;  %v3860_v19 = vpop.eup %3859  ;;  %v4944_v57 = vld [vmem:[#allocation34_spill] sm:$0xff] }
 0x1f6   :  { %v2580_v0 = vpop.f32.mrf.mxu0  ;;  %v2486_v38 = vadd.f32 %v4637_v21, %v2373_v61  ;;  %v2682_v1 = vadd.f32 %v4691_v36, %v2569_v24  ;;  %v4741_v21 = vadd.f32 %v4657_v9, %v2385_v42  ;;  %v2389_v36 = vadd.f32 %v4936_v35, %v4935_v14  ;;  %v4938_v20 = vld [vmem:[#allocation17_spill] sm:$0xff]  ;;  %v3862_v61 = vpop.eup %3861  ;;  %v4948_v24 = vld [vmem:[#allocation22_spill] sm:$0xff] }
 0x1f7   :  { %v2693_v40 = vpop.f32.mrf.mxu1  ;;  %v2581_v34 = vadd.f32 %v2580_v0, %v4613_v5  ;;  %v2692_v48 = vadd.f32 %v2691_v41, %v2579_v60  ;;  %v2383_v5 = vadd.f32 %v4651_v63, %v4457_v29  ;;  %3867 = vtanh.f32 %v2690_v4  ;;  %v4955_v14 = vld [vmem:[#allocation33_spill] sm:$0xff] }
 0x1f8   :  { %v2584_v55 = vpop.f32.mrf.mxu0  ;;  %3869 = vtanh.f32 %v2678_v7  ;;  %v2492_v29 = vadd.f32 %v4645_v52, %v2379_v27  ;;  %v4937_v52 = vld [vmem:[#allocation26_spill] sm:$0xff]  ;;  %v2399_v4 = vadd.f32 %v4944_v57, %v4943_v30  ;;  %v4762_v2 = vadd.f32 %v4948_v24, %v2391_v26 }
 0x1f9   :  { %v2697_v12 = vpop.f32.mrf.mxu1  ;;  %v2585_v50 = vadd.f32 %v2584_v55, %v4616_v10  ;;  %v2694_v33 = vadd.f32 %v2693_v40, %v2581_v34  ;;  %3871 = vtanh.f32 %v2692_v48  ;;  %v4738_v22 = vadd.f32 %v4653_v44, %v2383_v5  ;;  %v4940_v44 = vld [vmem:[#allocation38_spill] sm:$0xff]  ;;  %v4949_v5 = vld [vmem:[#allocation24_spill] sm:$0xff] }
 0x1fa   :  { %v2586_v54 = vpop.f32.mrf.mxu0  ;;  %3873 = vtanh.f32 %v2680_v31  ;;  %v2571_v62 = vadd.f32 %v4938_v20, %v4937_v52  ;;  %v2393_v8 = vadd.f32 %v4941_v49, %v4940_v44  ;;  %v2395_v53 = vadd.f32 %v4942_v47, %v4940_v44  ;;  %v4945_v7 = vld [vmem:[#allocation30_spill] sm:$0xff]  ;;  %v3864_v31 = vpop.eup %3863 }
 0x1fb   :  { %v2699_v59 = vpop.f32.mrf.mxu1  ;;  %v2587_v25 = vadd.f32 %v2586_v54, %v4619_v23  ;;  %v2698_v3 = vadd.f32 %v2697_v12, %v2585_v50  ;;  %v2488_v23 = vadd.f32 %v4641_v17, %v2375_v32  ;;  %3875 = vtanh.f32 %v2694_v33  ;;  %v4946_v32 = vld [vmem:[#allocation31_spill] sm:$0xff]  ;;  %v4947_v50 = vld [vmem:[#allocation18_spill] sm:$0xff]  ;;  %v4951_v33 = vld [vmem:[#allocation32_spill] sm:$0xff] }
 0x1fc   :  { %v2588_v39 = vpop.f32.mrf.mxu0  ;;  %v4756_v34 = vadd.f32 %v4945_v7, %v2389_v36  ;;  %v2401_v48 = vadd.f32 %v4946_v32, %v4943_v30  ;;  %v2684_v54 = vadd.f32 %v4947_v50, %v2571_v62  ;;  %v2812_v36 = vmul.f32 0.5, %v3858_v46  ;;  %v4957_v46 = vld [vmem:[#allocation16_spill] sm:$0xff] }
 0x1fd   :  { %v2701_v10 = vpop.f32.mrf.mxu1  ;;  %v2589_v58 = vadd.f32 %v2588_v39, %v4622_v15  ;;  %v2700_v15 = vadd.f32 %v2699_v59, %v2587_v25  ;;  %3877 = vtanh.f32 %v2698_v3  ;;  %v4950_v25 = vld [vmem:[#allocation35_spill] sm:$0xff]  ;;  %v2813_v49 = vmul.f32 0.5, %v3860_v19 }
 0x1fe   :  { %v2590_v51 = vpop.f32.mrf.mxu0  ;;  %3879 = vtanh.f32 %v2682_v1  ;;  %v2403_v39 = vadd.f32 %v4950_v25, %v4949_v5  ;;  %v4953_v1 = vld [vmem:[#allocation29_spill] sm:$0xff]  ;;  %v4778_v35 = vadd.f32 %v4955_v14, %v2401_v48 }
 0x1ff   :  { %v2703_v63 = vpop.f32.mrf.mxu1  ;;  %v2591_v6 = vadd.f32 %v2590_v51, %v4629_v43  ;;  %v2702_v17 = vadd.f32 %v2701_v10, %v2589_v58  ;;  %3881 = vtanh.f32 %v2700_v15  ;;  %v4767_v58 = vadd.f32 %v4951_v33, %v2393_v8  ;;  %v2909_v25 = vld [vmem:[%s4839_s3 + $0x18] sm:$0xff] }
 0x200   :  { %v2594_v18 = vpop.f32.mrf.mxu0  ;;  %v4773_v15 = vadd.f32 %v4953_v1, %v2399_v4  ;;  %v2829_v48 = vadd.f32 0.5, %v2813_v49 }
 0x201   :  { %v2707_v13 = vpop.f32.mrf.mxu1  ;;  %v2595_v41 = vadd.f32 %v2594_v18, %v2482_v37  ;;  %v2704_v60 = vadd.f32 %v2703_v63, %v2591_v6  ;;  %3883 = vtanh.f32 %v2702_v17  ;;  %v4952_v37 = vld [vmem:[#allocation27_spill] sm:$0xff] }
 0x202   :  { %v2596_v45 = vpop.f32.mrf.mxu0  ;;  %v3866_v42 = vpop.eup %3865  ;;  %v4954_v6 = vld [vmem:[#allocation15_spill] sm:$0xff] }
 0x203   :  { %v2709_v43 = vpop.f32.mrf.mxu1  ;;  %v2597_v9 = vadd.f32 %v2596_v45, %v2484_v56  ;;  %v2708_v0 = vadd.f32 %v2707_v13, %v2595_v41  ;;  %v4770_v56 = vadd.f32 %v4952_v37, %v2395_v53  ;;  %v2405_v18 = vadd.f32 %v4954_v6, %v4949_v5  ;;  %v4956_v41 = vld [vmem:[#allocation14_spill] sm:$0xff] }
 0x204   :  { %v2598_v40 = vpop.f32.mrf.mxu0  ;;  %v4781_v45 = vadd.f32 %v4956_v41, %v2403_v39 }
 0x205   :  { %v2711_v11 = vpop.f32.mrf.mxu1  ;;  %v2710_v55 = vadd.f32 %v2709_v43, %v2597_v9  ;;  %v2599_v12 = vadd.f32 %v2598_v40, %v2486_v38  ;;  %3885 = vtanh.f32 %v2708_v0  ;;  %v3868_v38 = vpop.eup %3867  ;;  %v2844_v43 = vmul.f32 0.5, %v3866_v42 }
 0x206   :  { %v2600_v59 = vpop.f32.mrf.mxu0  ;;  %v3870_v17 = vpop.eup %3869  ;;  %v2845_v8 = vmul.f32 0.5, %v3868_v38  ;;  %v4785_v53 = vadd.f32 %v4957_v46, %v2405_v18  ;;  %v2912_v18 = vld [vmem:[%s4839_s3 + $0x30] sm:$0xff] }
 0x207   :  { %v2713_v27 = vpop.f32.mrf.mxu1  ;;  %3887 = vtanh.f32 %v2710_v55  ;;  %v2712_v10 = vadd.f32 %v2711_v11, %v2599_v12  ;;  %v2601_v3 = vadd.f32 %v2600_v59, %v2488_v23  ;;  %v3872_v62 = vpop.eup %3871  ;;  %v2828_v11 = vadd.f32 0.5, %v2812_v36 }
 0x208   :  { %3889 = vtanh.f32 %v2704_v60  ;;  %v2604_v51 = vpop.f32.mrf.mxu0  ;;  %v3874_v44 = vpop.eup %3873  ;;  %v2817_v60 = vmul.f32 0.5, %v3864_v31  ;;  %v2820_v30 = vmul.f32 0.5, %v3870_v17  ;;  %v2848_v57 = vmul.f32 0.5, %v3872_v62 }
 0x209   :  { %v2717_v63 = vpop.f32.mrf.mxu1  ;;  %3891 = vtanh.f32 %v2712_v10  ;;  %v2605_v13 = vadd.f32 %v2604_v51, %v2492_v29  ;;  %v2714_v52 = vadd.f32 %v2713_v27, %v2601_v3  ;;  %v2816_v29 = vmul.f32 0.5, %v3862_v61  ;;  %v3876_v40 = vpop.eup %3875 }
 0x20a   :  { %3893 = vtanh.f32 %v2684_v54  ;;  %v2606_v20 = vpop.f32.mrf.mxu0  ;;  %v3878_v19 = vpop.eup %3877  ;;  %v2821_v12 = vmul.f32 0.5, %v3874_v44  ;;  %v2860_v61 = vadd.f32 0.5, %v2844_v43  ;;  %v2908_v54 = vld [vmem:[%s4839_s3 + $0x10] sm:$0xff]  ;;  %v2861_v59 = vadd.f32 0.5, %v2845_v8 }
 0x20b   :  { %v2719_v23 = vpop.f32.mrf.mxu1  ;;  %v2718_v28 = vadd.f32 %v2717_v63, %v2605_v13  ;;  %v2607_v26 = vadd.f32 %v2606_v20, %v4734_v16  ;;  %3895 = vtanh.f32 %v2714_v52  ;;  %v3880_v32 = vpop.eup %3879  ;;  %v2832_v50 = vadd.f32 0.5, %v2816_v29 }
 0x20c   :  { %v2608_v9 = vpop.f32.mrf.mxu0  ;;  %v2833_v5 = vadd.f32 0.5, %v2817_v60  ;;  %v2849_v39 = vmul.f32 0.5, %v3876_v40  ;;  %v2836_v33 = vadd.f32 0.5, %v2820_v30  ;;  %v2864_v37 = vadd.f32 0.5, %v2848_v57 }
 0x20d   :  { %v2721_v47 = vpop.f32.mrf.mxu1  ;;  %3897 = vtanh.f32 %v2718_v28  ;;  %v2720_v0 = vadd.f32 %v2719_v23, %v2607_v26  ;;  %v2609_v4 = vadd.f32 %v2608_v9, %v4738_v22  ;;  %v3882_v22 = vpop.eup %3881  ;;  %v2852_v3 = vmul.f32 0.5, %v3878_v19 }
 0x20e   :  { %v2610_v16 = vpop.f32.mrf.mxu0  ;;  %v3884_v42 = vpop.eup %3883  ;;  %v4796_v1 = vadd.f32 0.5, %v2821_v12  ;;  %v2924_v6 = vmul.f32 %v2908_v54, %v2860_v61  ;;  %v2925_v14 = vmul.f32 %v2909_v25, %v2861_v59  ;;  %v2865_v41 = vadd.f32 0.5, %v2849_v39  ;;  %v2917_v61 = vld [vmem:[%s4839_s3 + $0x58] sm:$0xff] }
 0x20f   :  { %v2723_v55 = vpop.f32.mrf.mxu1  ;;  %3899 = vtanh.f32 %v2720_v0  ;;  %v2611_v7 = vadd.f32 %v2610_v16, %v4741_v21  ;;  %v2722_v27 = vadd.f32 %v2721_v47, %v2609_v4  ;;  %v2928_v44 = vmul.f32 %v2912_v18, %v2864_v37 }
 0x210   :  { %v2614_v31 = vpop.f32.mrf.mxu0  ;;  %v2868_v49 = vadd.f32 0.5, %v2852_v3  ;;  %v2856_v60 = vmul.f32 0.5, %v3884_v42  ;;  %v2824_v30 = vmul.f32 0.5, %v3880_v32 }
 0x211   :  { %v2727_v24 = vpop.f32.mrf.mxu1  ;;  %v2724_v10 = vadd.f32 %v2723_v55, %v2611_v7  ;;  %v2615_v21 = vadd.f32 %v2614_v31, %v4756_v34  ;;  %3901 = vtanh.f32 %v2722_v27  ;;  %v2853_v34 = vmul.f32 0.5, %v3882_v22 }
 0x212   :  { %v2616_v51 = vpop.f32.mrf.mxu0  ;;  %v3886_v38 = vpop.eup %3885  ;;  %v2872_v22 = vadd.f32 0.5, %v2856_v60 }
 0x213   :  { %v2729_v63 = vpop.f32.mrf.mxu1  ;;  %3903 = vtanh.f32 %v2724_v10  ;;  %v2728_v13 = vadd.f32 %v2727_v24, %v2615_v21  ;;  %v2940_v36 = vmul.f32 %v3886_v38, %v2828_v11  ;;  %v2617_v52 = vadd.f32 %v2616_v51, %v4762_v2  ;;  %v2913_v2 = vld [vmem:[%s4839_s3 + $0x38] sm:$0xff] }
 0x214   :  { %v3888_v17 = vpop.eup %3887  ;;  %v2618_v20 = vpop.f32.mrf.mxu0  ;;  %v2869_v57 = vadd.f32 0.5, %v2853_v34  ;;  %v2929_v54 = vmul.f32 %v2913_v2, %v2865_v41 }
 0x215   :  { %v2731_v23 = vpop.f32.mrf.mxu1  ;;  %v3890_v62 = vpop.eup %3889  ;;  %v2941_v43 = vmul.f32 %v3888_v17, %v2829_v48  ;;  %3905 = vtanh.f32 %v2728_v13  ;;  %v2619_v28 = vadd.f32 %v2618_v20, %v4767_v58  ;;  %v2956_v29 = vadd.f32 %v2940_v36, %v2924_v6  ;;  %v2916_v58 = vld [vmem:[%s4839_s3 + $0x50] sm:$0xff] }
 0x216   :  { %v3892_v26 = vpop.eup %3891  ;;  %v2730_v8 = vadd.f32 %v2729_v63, %v2617_v52  ;;  %v2620_v9 = vpop.f32.mrf.mxu0  ;;  %v2857_v4 = vmul.f32 0.5, %v3890_v62  ;;  %v2932_v24 = vmul.f32 %v2916_v58, %v2868_v49  ;;  %v2933_v21 = vmul.f32 %v2917_v61, %v2869_v57 }
 0x217   :  { %v2733_v47 = vpop.f32.mrf.mxu1  ;;  %v3894_v46 = vpop.eup %3893  ;;  %v2957_v0 = vadd.f32 %v2941_v43, %v2925_v14  ;;  %v2944_v40 = vmul.f32 %v3892_v26, %v2832_v50  ;;  %v2621_v11 = vadd.f32 %v2620_v9, %v4770_v56  ;;  %3004 = vst [vmem:[#allocation8 + $0x10] sm:$0xff] %v2956_v29  ;;  %v2732_v16 = vadd.f32 %v2731_v23, %v2619_v28 }
 0x218   :  { %v2624_v55 = vpop.f32.mrf.mxu0  ;;  %v3896_v12 = vpop.eup %3895  ;;  %3907 = vtanh.f32 %v2956_v29  ;;  %v2825_v50 = vmul.f32 0.5, %v3894_v46  ;;  %v2840_v6 = vadd.f32 0.5, %v2824_v30 }
 0x219   :  { %v2737_v19 = vpop.f32.mrf.mxu1  ;;  %3005 = vst [vmem:[#allocation8 + $0x18] sm:$0xff] %v2957_v0  ;;  %v2960_v7 = vadd.f32 %v2944_v40, %v2928_v44  ;;  %v2734_v56 = vadd.f32 %v2733_v47, %v2621_v11  ;;  %v2625_v32 = vadd.f32 %v2624_v55, %v4773_v15  ;;  %v2945_v59 = vmul.f32 %v3896_v12, %v2833_v5  ;;  %v2920_v15 = vld [vmem:[%s4839_s3 + $0x70] sm:$0xff] }
 0x21a   :  { %v3898_v48 = vpop.eup %3897  ;;  %3909 = vtanh.f32 %v2730_v8  ;;  %v2626_v27 = vpop.f32.mrf.mxu0  ;;  %v2873_v5 = vadd.f32 0.5, %v2857_v4  ;;  %v2841_v14 = vadd.f32 0.5, %v2825_v50  ;;  %v2936_v52 = vmul.f32 %v2920_v15, %v2872_v22 }
 0x21b   :  { %v2739_v31 = vpop.f32.mrf.mxu1  ;;  %3008 = vst [vmem:[#allocation8 + $0x30] sm:$0xff] %v2960_v7  ;;  %v2948_v25 = vmul.f32 %v3898_v48, %v2836_v33  ;;  %v2627_v39 = vadd.f32 %v2626_v27, %v4778_v35  ;;  %v2961_v42 = vadd.f32 %v2945_v59, %v2929_v54  ;;  %3911 = vtanh.f32 %v2732_v16  ;;  %v2921_v35 = vld [vmem:[%s4839_s3 + $0x78] sm:$0xff]  ;;  %s3051_s3 = sshll.u32 %s4052_s13, 4  ;;  %s3052_s3 = int_to_ptr.vmem [resolvable:$true] %s3051_s3 }
 0x21c   :  { %v3900_v10 = vpop.eup %3899  ;;  %v2738_v37 = vadd.f32 %v2737_v19, %v2625_v32  ;;  %v2628_v3 = vpop.f32.mrf.mxu0  ;;  %3913 = vtanh.f32 %v2734_v56  ;;  %v2937_v62 = vmul.f32 %v2921_v35, %v2873_v5  ;;  %s3997_s14 = scalar_lea.vmem %s3052_s3, 2048  ;;  %p4002_p11 = scmp.lt.s32.totalorder %s3052_s3, %s3052_s3 }
 0x21d   :  { %v2964_v51 = vadd.f32 %v2948_v25, %v2932_v24  ;;  %v2949_v63 = vmul.f32 %v3900_v10, %v4796_v1  ;;  %v2741_v38 = vpop.f32.mrf.mxu1  ;;  %3915 = vtanh.f32 %v2957_v0  ;;  %3009 = vst [vmem:[#allocation8 + $0x38] sm:$0xff] %v2961_v42  ;;  %v2740_v33 = vadd.f32 %v2739_v31, %v2627_v39  ;;  %p3998_p10 = scmp.ne.s32.totalorder %s3052_s3, %s3997_s14  ;;  %p4003_p12 = scmp.lt.s32.totalorder %s3997_s14, %s3997_s14 }
 0x21e   :  { %v2629_v18 = vadd.f32 %v2628_v3, %v4781_v45  ;;  %v2630_v13 = vpop.f32.mrf.mxu0  ;;  %v3902_v17 = vpop.eup %3901  ;;  %3917 = vtanh.f32 %v2960_v7 }
 0x21f   :  { %3012 = vst [vmem:[#allocation8 + $0x50] sm:$0xff] %v2964_v51  ;;  %v2965_v34 = vadd.f32 %v2949_v63, %v2933_v21  ;;  %v2631_v1 = vadd.f32 %v2630_v13, %v4785_v53  ;;  %v2952_v20 = vmul.f32 %v3902_v17, %v2840_v6  ;;  %3919 = vtanh.f32 %v2738_v37  ;;  %v2743_v45 = vpop.f32.mrf.mxu1  ;;  %p4004_p13 = por %p4003_p12, %p4002_p11 }
 0x220   :  { %v3904_v36 = vpop.eup %3903  ;;  %v2742_v23 = vadd.f32 %v2741_v38, %v2629_v18  ;;  %3921 = vtanh.f32 %v2961_v42 }
 0x221   :  { %3013 = vst [vmem:[#allocation8 + $0x58] sm:$0xff] %v2965_v34  ;;  %v2953_v41 = vmul.f32 %v3904_v36, %v2841_v14  ;;  %v2968_v28 = vadd.f32 %v2952_v20, %v2936_v52  ;;  %3923 = vtanh.f32 %v2740_v33  ;;  %v2744_v26 = vadd.f32 %v2743_v45, %v2631_v1  ;;  %p4005_p0 = pnand %p4004_p13, %p3998_p10 }
 0x222   :  { %v3906_v43 = vpop.eup %3905  ;;  %3925 = vtanh.f32 %v2742_v23 }
 0x223   :  { %v2969_v44 = vadd.f32 %v2953_v41, %v2937_v62  ;;  %v2876_v49 = vmul.f32 0.5, %v3906_v43  ;;  %3927 = vtanh.f32 %v2964_v51  ;;  %3016 = vst [vmem:[#allocation8 + $0x70] sm:$0xff] %v2968_v28 }
 0x224   :  { %3929 = vtanh.f32 %v2965_v34 }
 0x225   :  { %3017 = vst [vmem:[#allocation8 + $0x78] sm:$0xff] %v2969_v44  ;;  %v2892_v53 = vadd.f32 0.5, %v2876_v49  ;;  %v3908_v29 = vpop.eup %3907  ;;  %3931 = vtanh.f32 %v2744_v26 }
 0x226   :  { %4008 = shalt.err (!%p4005_p0)
}
 0x227   :  { %s4053_s15 = smov 512   ;;  %s4054_s16 = smov 32   ;;  %v3910_v8 = vpop.eup %3909  ;;  %3933 = vtanh.f32 %v2968_v28  ;;  %v2988_v9 = vmul.f32 %v3908_v29, %v2892_v53 }
 0x228   :  { %3057 = dma.vmem_to_hbm [thread:$0]  %s3052_s3, 2048, %s4841_s5, [#allocation9], %s4053_s15, %s4053_s15, %s4054_s16   ;;  %v2877_v47 = vmul.f32 0.5, %v3910_v8  ;;  %v3912_v46 = vpop.eup %3911  ;;  %3935 = vtanh.f32 %v2969_v44 }
 0x229   :  { %3020 = vst [vmem:[#allocation7 + $0x10] sm:$0xff] %v2988_v9  ;;  %v3914_v2 = vpop.eup %3913  ;;  %v2880_v0 = vmul.f32 0.5, %v3912_v46  ;;  %s4055_s5 = smov [#allocation7]  }
 0x22a   :  { %v2893_v60 = vadd.f32 0.5, %v2877_v47  ;;  %v3916_v40 = vpop.eup %3915  ;;  %v2881_v11 = vmul.f32 0.5, %v3914_v2  ;;  %s3039_s19 = sshll.u32 %s4055_s5, 4  ;;  %s3040_s19 = int_to_ptr.vmem [resolvable:$true] %s3039_s19 }
 0x22b   :  { %v3918_v30 = vpop.eup %3917  ;;  %v2896_v57 = vadd.f32 0.5, %v2880_v0  ;;  %s4017_s20 = scalar_lea.vmem %s3040_s19, 2048  ;;  %p4022_p2 = scmp.lt.s32.totalorder %s3040_s19, %s3040_s19 }
 0x22c   :  { %v2989_v58 = vmul.f32 %v3916_v40, %v2893_v60  ;;  %v3920_v4 = vpop.eup %3919  ;;  %v2897_v16 = vadd.f32 0.5, %v2881_v11  ;;  %p4018_p1 = scmp.ne.s32.totalorder %s3040_s19, %s4017_s20  ;;  %p4023_p3 = scmp.lt.s32.totalorder %s4017_s20, %s4017_s20 }
 0x22d   :  { %v3922_v55 = vpop.eup %3921  ;;  %v2992_v19 = vmul.f32 %v3918_v30, %v2896_v57  ;;  %v2884_v12 = vmul.f32 0.5, %v3920_v4 }
 0x22e   :  { %3021 = vst [vmem:[#allocation7 + $0x18] sm:$0xff] %v2989_v58  ;;  %v3924_v61 = vpop.eup %3923  ;;  %v2993_v7 = vmul.f32 %v3922_v55, %v2897_v16  ;;  %p4024_p4 = por %p4023_p3, %p4022_p2 }
 0x22f   :  { %v3926_v56 = vpop.eup %3925  ;;  %3024 = vst [vmem:[#allocation7 + $0x30] sm:$0xff] %v2992_v19  ;;  %v2900_v32 = vadd.f32 0.5, %v2884_v12  ;;  %v2885_v48 = vmul.f32 0.5, %v3924_v61 }
 0x230   :  { %v3928_v50 = vpop.eup %3927  ;;  %3025 = vst [vmem:[#allocation7 + $0x38] sm:$0xff] %v2993_v7  ;;  %v2888_v54 = vmul.f32 0.5, %v3926_v56  ;;  %p4025_p5 = pnand %p4024_p4, %p4018_p1 }
 0x231   :  { %v3930_v59 = vpop.eup %3929  ;;  %v2996_v27 = vmul.f32 %v3928_v50, %v2900_v32  ;;  %v2901_v31 = vadd.f32 0.5, %v2885_v48 }
 0x232   :  { %v3932_v24 = vpop.eup %3931  ;;  %v2904_v22 = vadd.f32 0.5, %v2888_v54 }
 0x233   :  { %3028 = vst [vmem:[#allocation7 + $0x50] sm:$0xff] %v2996_v27  ;;  %v2997_v39 = vmul.f32 %v3930_v59, %v2901_v31  ;;  %v2889_v10 = vmul.f32 0.5, %v3932_v24 }
 0x234   :  { %v3934_v25 = vpop.eup %3933 }
 0x235   :  { %v3000_v21 = vmul.f32 %v3934_v25, %v2904_v22  ;;  %3029 = vst [vmem:[#allocation7 + $0x58] sm:$0xff] %v2997_v39  ;;  %v2905_v42 = vadd.f32 0.5, %v2889_v10  ;;  %v3936_v37 = vpop.eup %3935 }
 0x237   :  { %3032 = vst [vmem:[#allocation7 + $0x70] sm:$0xff] %v3000_v21  ;;  %v3001_v3 = vmul.f32 %v3936_v37, %v2905_v42 }
 0x239   :  { %3033 = vst [vmem:[#allocation7 + $0x78] sm:$0xff] %v3001_v3 }
 0x23a   :  { %4028 = shalt.err (!%p4025_p5)
}
 0x23b   :  { %3045 = dma.vmem_to_hbm [thread:$0]  %s3040_s19, 2048, %s4840_s4, [#allocation4], %s4053_s15, %s4053_s15, %s4054_s16  }
 0x23c   :  { %4041 = dma.done.wait [#allocation4], 2048  }
 0x23d   :  { %4042 = vsyncadd [#allocation4], 4294965248 }
 0x23e   :  { %4043 = dma.done.wait [#allocation9], 2048  }
 0x23f   :  { %4044 = vsyncadd [#allocation9], 4294965248 }
 0x240   :  { %3064 = vsyncpa [#allocation3], 1 }
 0x241   :  { %3065 = vsyncpa [#allocation6], 1 }
 0x242   :  { %3066 = vsyncpa [#allocation4], 1 }
 0x243   :  { %3067 = vsyncpa [#allocation9], 1 }

</bundles_post_ra>
